<compile_context>
chip_gen: v7x
topology: tpu7x:2x2x1
jax: 0.10.0
libtpu: 0.0.40
codegen_flags: <defaults>
</compile_context>

<pallas_src>
import functools

import jax
import jax.numpy as jnp
from jax import lax
from jax.experimental import pallas as pl
from jax.experimental.pallas import tpu as pltpu

NEG_INF = -1e30
VMEM_LIMIT = 48 * 1024 * 1024   # sized for v7x's 64 MiB VMEM; well under v5e/v6e's 128 MiB


def _pack_attn(attn_l, attn_r):
    """Pack per-head attention vectors into (H*D, 2H) so z @ A == [el | er]."""
    H, D = attn_l.shape
    eye = jnp.eye(H, dtype=jnp.float32)
    al = (attn_l.astype(jnp.float32)[:, :, None] * eye[:, None, :]).reshape(H * D, H)
    ar = (attn_r.astype(jnp.float32)[:, :, None] * eye[:, None, :]).reshape(H * D, H)
    return jnp.concatenate([al, ar], axis=1)                      # (H*D, 2H) f32


def _attention_tile(adj_bias, z, sc_all, sc_tile, b, *, num_heads, head_dim):
    """One dst-node tile of GATConv: ReLU(softmax(leaky(er+el)+mask) @ z + bias)."""
    H, D = num_heads, head_dim
    el_t = sc_all[:, :H].T                          # (H, N)  source attention terms
    er_t = sc_tile[:, H:].T                         # (H, T)  destination terms (tile)

    s = er_t[:, :, None] + el_t[:, None, :]         # (H, T, N)  all heads at once
    s = jnp.maximum(s, 0.2 * s)                     # LeakyReLU(0.2)
    s = s + adj_bias[None, :, :]                    # additive -inf edge mask (shared by heads)

    m = jnp.max(s, axis=-1, keepdims=True)
    p = jnp.exp(s - m)
    inv = pl.reciprocal(jnp.sum(p, axis=-1, keepdims=True), approx=True)   # EUP slot
    alpha = (p * inv).astype(jnp.bfloat16)          # (H, T, N)

    heads = [jnp.dot(alpha[h], z[:, h * D:(h + 1) * D],
                     preferred_element_type=jnp.float32) for h in range(H)]
    agg = jnp.concatenate(heads, axis=-1)           # (T, H*D), lane-dense

    # Zero-in-degree destinations aggregate nothing (DGL edge_softmax semantics).
    has_edge = (jnp.max(adj_bias, axis=-1, keepdims=True) > -1.0).astype(jnp.float32)
    return jnp.maximum(agg * has_edge + b, 0.0)     # fused bias + ReLU, (T, H*D) f32


# ---------------------------------------------------------------------------- kernel A
def _project_kernel(x_ref, w_ref, a_ref, z_ref, sc_ref):
    # z = x @ W (bf16 operands, f32 accumulation); scores = z @ A_pack (tiny, kept f32).
    z = jnp.dot(x_ref[...], w_ref[...], preferred_element_type=jnp.float32)
    sc_ref[...] = jnp.dot(z, a_ref[...], preferred_element_type=jnp.float32)
    z_ref[...] = z.astype(z_ref.dtype)


# ---------------------------------------------------------------------------- kernel B
def _attn_project_kernel(adj_ref, z1_ref, sc1_all_ref, sc1_tile_ref, b1_ref,
                         w2_ref, a2_ref, z2_ref, sc2_ref, *, num_heads, head_dim):
    h1 = _attention_tile(adj_ref[...].astype(jnp.float32), z1_ref[...],
                         sc1_all_ref[...], sc1_tile_ref[...], b1_ref[...],
                         num_heads=num_heads, head_dim=head_dim)        # (T, H*D) f32
    # Layer-2 projection fused in: h1 never leaves VMEM.
    z2 = jnp.dot(h1.astype(jnp.bfloat16), w2_ref[...],
                 preferred_element_type=jnp.float32)
    sc2_ref[...] = jnp.dot(z2, a2_ref[...], preferred_element_type=jnp.float32)
    z2_ref[...] = z2.astype(z2_ref.dtype)


# ---------------------------------------------------------------------------- kernel C
def _attn_pool_classify_kernel(adj_ref, z2_ref, sc2_all_ref, sc2_tile_ref, b2_ref,
                               pool_t_ref, wc_ref, bc_ref, out_ref, hg_acc, *,
                               num_heads, head_dim):
    @pl.when(pl.program_id(0) == 0)
    def _():
        hg_acc[...] = jnp.zeros_like(hg_acc)

    h2 = _attention_tile(adj_ref[...].astype(jnp.float32), z2_ref[...],
                         sc2_all_ref[...], sc2_tile_ref[...], b2_ref[...],
                         num_heads=num_heads, head_dim=head_dim)        # (T, H*D) f32

    # mean_nodes: pool_t tile is (T, G); contract over the node (tile) axis -> (G, H*D).
    hg_acc[...] += lax.dot_general(
        pool_t_ref[...], h2.astype(jnp.bfloat16),
        dimension_numbers=(((0,), (0,)), ((), ())),
        preferred_element_type=jnp.float32)

    @pl.when(pl.program_id(0) == pl.num_programs(0) - 1)
    def _():
        out_ref[...] = (jnp.dot(hg_acc[...], wc_ref[...],
                                preferred_element_type=jnp.float32) + bc_ref[...])


# ---------------------------------------------------------------------------- wrappers
def _gat_project(x, w, a, *, tile):
    n, f_in = x.shape
    hxd = w.shape[1]
    n_sc = a.shape[1]
    flops = 2 * n * f_in * hxd + 2 * n * hxd * n_sc
    bytes_acc = (n * f_in * 2 + f_in * hxd * 2 + hxd * n_sc * 4
                 + n * hxd * 2 + n * n_sc * 4)
    return pl.pallas_call(
        _project_kernel,
        out_shape=(jax.ShapeDtypeStruct((n, hxd), jnp.bfloat16),
                   jax.ShapeDtypeStruct((n, n_sc), jnp.float32)),
        grid=(n // tile,),
        in_specs=[pl.BlockSpec((tile, f_in), lambda i: (i, 0)),
                  pl.BlockSpec((f_in, hxd), lambda i: (0, 0)),
                  pl.BlockSpec((hxd, n_sc), lambda i: (0, 0))],
        out_specs=(pl.BlockSpec((tile, hxd), lambda i: (i, 0)),
                   pl.BlockSpec((tile, n_sc), lambda i: (i, 0))),
        compiler_params=pltpu.CompilerParams(dimension_semantics=("parallel",),
                                             vmem_limit_bytes=VMEM_LIMIT),
        cost_estimate=pl.CostEstimate(flops=int(flops), transcendentals=0,
                                      bytes_accessed=int(bytes_acc)),
    )(x, w, a)


def _gat_attend_project(adj_bias, z1, sc1, b1, w2, a2, *, num_heads, head_dim, tile):
    n, hxd = z1.shape
    n_sc = sc1.shape[1]
    flops = (2 * num_heads * n * n * head_dim + 10 * num_heads * n * n
             + 2 * n * hxd * hxd + 2 * n * hxd * n_sc)
    bytes_acc = (n * n * 2 + 2 * n * hxd * 2 + 2 * n * n_sc * 4 + hxd * 4
                 + hxd * hxd * 2 + hxd * n_sc * 4)
    kernel = functools.partial(_attn_project_kernel, num_heads=num_heads,
                               head_dim=head_dim)
    return pl.pallas_call(
        kernel,
        out_shape=(jax.ShapeDtypeStruct((n, hxd), jnp.bfloat16),
                   jax.ShapeDtypeStruct((n, n_sc), jnp.float32)),
        grid=(n // tile,),
        in_specs=[pl.BlockSpec((tile, n), lambda i: (i, 0)),     # adj bias, dst-row tile
                  pl.BlockSpec((n, hxd), lambda i: (0, 0)),      # z1, all source nodes
                  pl.BlockSpec((n, n_sc), lambda i: (0, 0)),     # scores1 (el part), all src
                  pl.BlockSpec((tile, n_sc), lambda i: (i, 0)),  # scores1 (er part), dst tile
                  pl.BlockSpec((1, hxd), lambda i: (0, 0)),      # bias1
                  pl.BlockSpec((hxd, hxd), lambda i: (0, 0)),    # W2
                  pl.BlockSpec((hxd, n_sc), lambda i: (0, 0))],  # A2_pack
        out_specs=(pl.BlockSpec((tile, hxd), lambda i: (i, 0)),
                   pl.BlockSpec((tile, n_sc), lambda i: (i, 0))),
        compiler_params=pltpu.CompilerParams(dimension_semantics=("parallel",),
                                             vmem_limit_bytes=VMEM_LIMIT),
        cost_estimate=pl.CostEstimate(flops=int(flops),
                                      transcendentals=int(num_heads * n * n),
                                      bytes_accessed=int(bytes_acc)),
    )(adj_bias, z1, sc1, sc1, b1, w2, a2)


def _gat_attend_pool_classify(adj_bias, z2, sc2, b2, pool_t, wc_pad, bc_pad, *,
                              num_heads, head_dim, tile):
    n, hxd = z2.shape
    n_sc = sc2.shape[1]
    g = pool_t.shape[1]
    p = wc_pad.shape[1]
    flops = (2 * num_heads * n * n * head_dim + 10 * num_heads * n * n
             + 2 * g * n * hxd + 2 * g * hxd * p)
    bytes_acc = (n * n * 2 + 2 * n * hxd * 2 + 2 * n * n_sc * 4 + hxd * 4
                 + n * g * 2 + hxd * p * 4 + p * 4 + g * p * 4)
    kernel = functools.partial(_attn_pool_classify_kernel, num_heads=num_heads,
                               head_dim=head_dim)
    return pl.pallas_call(
        kernel,
        out_shape=jax.ShapeDtypeStruct((g, p), jnp.float32),
        grid=(n // tile,),
        in_specs=[pl.BlockSpec((tile, n), lambda i: (i, 0)),     # adj bias, dst-row tile
                  pl.BlockSpec((n, hxd), lambda i: (0, 0)),      # z2, all source nodes
                  pl.BlockSpec((n, n_sc), lambda i: (0, 0)),     # scores2 (el part), all src
                  pl.BlockSpec((tile, n_sc), lambda i: (i, 0)),  # scores2 (er part), dst tile
                  pl.BlockSpec((1, hxd), lambda i: (0, 0)),      # bias2
                  pl.BlockSpec((tile, g), lambda i: (i, 0)),     # pool^T, dst tile
                  pl.BlockSpec((hxd, p), lambda i: (0, 0)),      # classifier W (128-padded)
                  pl.BlockSpec((1, p), lambda i: (0, 0))],       # classifier b (128-padded)
        out_specs=pl.BlockSpec((g, p), lambda i: (0, 0)),        # logits accumulate-in-place
        scratch_shapes=[pltpu.VMEM((g, hxd), jnp.float32)],      # pooled graph embeddings
        compiler_params=pltpu.CompilerParams(dimension_semantics=("arbitrary",),
                                             vmem_limit_bytes=VMEM_LIMIT),
        cost_estimate=pl.CostEstimate(flops=int(flops),
                                      transcendentals=int(num_heads * n * n),
                                      bytes_accessed=int(bytes_acc)),
    )(adj_bias, z2, sc2, sc2, b2, pool_t, wc_pad, bc_pad)


def gat_graph_classifier(emb, adj, pool, params, *, num_heads, hid_dim, out_dim,
                         tile_dst=16):
    n = emb.shape[0]
    hxd = num_heads * hid_dim
    assert n % tile_dst == 0 and tile_dst % 8 == 0

    # Hoisted / precomputed once, shared by both layers.
    adj_bias = jnp.where(adj > 0, 0.0, NEG_INF).astype(jnp.bfloat16)   # additive -inf mask
    a1 = _pack_attn(params["al1"], params["ar1"])
    a2 = _pack_attn(params["al2"], params["ar2"])
    w1 = params["w1"].astype(jnp.bfloat16)
    w2 = params["w2"].astype(jnp.bfloat16)

    # Classifier weights padded to a lane-dense 128-wide block; pool transposed to (N, G).
    pad = ((out_dim + 127) // 128) * 128
    wc_pad = jnp.zeros((hxd, pad), jnp.float32).at[:, :out_dim].set(params["wc"])
    bc_pad = jnp.zeros((1, pad), jnp.float32).at[:, :out_dim].set(params["bc"])
    pool_t = pool.T.astype(jnp.bfloat16)

    # Kernel A: layer-1 projection (z1, scores1).
    z1, sc1 = _gat_project(emb.astype(jnp.bfloat16), w1, a1, tile=tile_dst)
    # Kernel B: layer-1 attention + ReLU fused with layer-2 projection (h1 stays in VMEM).
    z2, sc2 = _gat_attend_project(adj_bias, z1, sc1, params["b1"], w2, a2,
                                  num_heads=num_heads, head_dim=hid_dim, tile=tile_dst)
    # Kernel C: layer-2 attention + ReLU + mean_nodes + classifier (h2 stays in VMEM).
    logits = _gat_attend_pool_classify(adj_bias, z2, sc2, params["b2"], pool_t,
                                       wc_pad, bc_pad, num_heads=num_heads,
                                       head_dim=hid_dim, tile=tile_dst)
    return logits[:, :out_dim]


def _reference(emb, adj, pool, params, *, num_heads, hid_dim):
    """Pure-JAX f32 reference matching DGL GATConv semantics (self-loop graphs)."""
    def layer(x, w, al, ar, b):
        z = x @ w
        outs = []
        for h in range(num_heads):
            zh = z[:, h * hid_dim:(h + 1) * hid_dim]
            el = zh @ al[h]
            er = zh @ ar[h]
            e = er[:, None] + el[None, :]
            e = jnp.where(e > 0, e, 0.2 * e)
            e = jnp.where(adj > 0, e, NEG_INF)
            e = e - jnp.max(e, axis=-1, keepdims=True)
            p = jnp.exp(e)
            alpha = p / jnp.sum(p, axis=-1, keepdims=True)
            outs.append(alpha @ zh)
        return jnp.concatenate(outs, axis=-1) + b
    h1 = jnp.maximum(layer(emb, params["w1"], params["al1"], params["ar1"], params["b1"]), 0.0)
    h2 = jnp.maximum(layer(h1, params["w2"], params["al2"], params["ar2"], params["b2"]), 0.0)
    hg = pool @ h2
    return hg @ params["wc"] + params["bc"]


if __name__ == "__main__":
    # 4 graphs x 8 nodes, in_dim=32, hid=16, heads=4, out=3 -> N=32, dst tile 16, grid=(2,).
    NUM_GRAPHS, NODES_PER_GRAPH = 4, 8
    N = NUM_GRAPHS * NODES_PER_GRAPH
    IN_DIM, HID_DIM, NUM_HEADS, OUT_DIM = 32, 16, 4, 3
    HXD = NUM_HEADS * HID_DIM

    key = jax.random.PRNGKey(0)
    ks = jax.random.split(key, 10)

    emb = jax.random.normal(ks[0], (N, IN_DIM), dtype=jnp.float32)

    # Dense adjacency: per-graph bidirectional ring + self loops. adj[v, u] = edge u->v.
    adj_rows = [[0.0] * N for _ in range(N)]
    for g in range(NUM_GRAPHS):
        base = g * NODES_PER_GRAPH
        for i in range(NODES_PER_GRAPH):
            u = base + i
            v = base + (i + 1) % NODES_PER_GRAPH
            adj_rows[v][u] = 1.0
            adj_rows[u][v] = 1.0
            adj_rows[u][u] = 1.0
    adj = jnp.array(adj_rows, dtype=jnp.float32)

    # mean_nodes pooling matrix (G, N).
    pool_rows = [[0.0] * N for _ in range(NUM_GRAPHS)]
    for g in range(NUM_GRAPHS):
        for i in range(NODES_PER_GRAPH):
            pool_rows[g][g * NODES_PER_GRAPH + i] = 1.0 / NODES_PER_GRAPH
    pool = jnp.array(pool_rows, dtype=jnp.float32)

    s = 0.1
    params = {
        "w1":  s * jax.random.normal(ks[1], (IN_DIM, HXD), dtype=jnp.float32),
        "al1": s * jax.random.normal(ks[2], (NUM_HEADS, HID_DIM), dtype=jnp.float32),
        "ar1": s * jax.random.normal(ks[3], (NUM_HEADS, HID_DIM), dtype=jnp.float32),
        "b1":  jnp.zeros((1, HXD), dtype=jnp.float32),
        "w2":  s * jax.random.normal(ks[4], (HXD, HXD), dtype=jnp.float32),
        "al2": s * jax.random.normal(ks[5], (NUM_HEADS, HID_DIM), dtype=jnp.float32),
        "ar2": s * jax.random.normal(ks[6], (NUM_HEADS, HID_DIM), dtype=jnp.float32),
        "b2":  jnp.zeros((1, HXD), dtype=jnp.float32),
        "wc":  s * jax.random.normal(ks[7], (HXD, OUT_DIM), dtype=jnp.float32),
        "bc":  s * jax.random.normal(ks[8], (1, OUT_DIM), dtype=jnp.float32),
    }

    fwd = jax.jit(functools.partial(gat_graph_classifier, num_heads=NUM_HEADS,
                                    hid_dim=HID_DIM, out_dim=OUT_DIM, tile_dst=16))
    out = jax.block_until_ready(fwd(emb, adj, pool, params))

    ref = _reference(emb, adj, pool, params, num_heads=NUM_HEADS, hid_dim=HID_DIM)
    assert out.shape == (NUM_GRAPHS, OUT_DIM)
    # bf16 MXU operands + approx reciprocal => slightly looser tolerance than pure f32.
    assert jnp.allclose(out, ref, atol=2e-2, rtol=2e-2), (out, ref)

    print("KERNEL_OK")
</pallas_src>

<mosaic_0001>
module attributes {stable_mosaic.version = 11 : i64} {
  func.func @_project_kernel(%arg0: i32, %arg1: memref<16x32xbf16, #tpu.memory_space<vmem>>, %arg2: memref<32x64xbf16, #tpu.memory_space<vmem>>, %arg3: memref<64x8xf32, #tpu.memory_space<vmem>>, %arg4: memref<16x64xbf16, #tpu.memory_space<vmem>>, %arg5: memref<16x8xf32, #tpu.memory_space<vmem>>) attributes {dimension_semantics = [#tpu.dimension_semantics<parallel>], iteration_bounds = array<i64: 2>, scalar_prefetch = 0 : i64, scratch_operands = 0 : i64, tpu.core_type = #tpu.core_type<tc>, window_params = [{transform_indices = @transform_0, window_bounds = array<i64: 16, 32>}, {pipeline_mode = #tpu.pipeline_mode<synchronous>, transform_indices = @transform_1, window_bounds = array<i64: 32, 64>}, {pipeline_mode = #tpu.pipeline_mode<synchronous>, transform_indices = @transform_2, window_bounds = array<i64: 64, 8>}, {transform_indices = @transform_3, window_bounds = array<i64: 16, 64>}, {transform_indices = @transform_4, window_bounds = array<i64: 16, 8>}]} {
    %c0 = arith.constant 0 : index
    %c0_0 = arith.constant 0 : index
    %0 = vector.load %arg1[%c0, %c0_0] : memref<16x32xbf16, #tpu.memory_space<vmem>>, vector<16x32xbf16>
    %c0_1 = arith.constant 0 : index
    %c0_2 = arith.constant 0 : index
    %1 = vector.load %arg2[%c0_1, %c0_2] : memref<32x64xbf16, #tpu.memory_space<vmem>>, vector<32x64xbf16>
    %cst = arith.constant dense<0.000000e+00> : vector<16x64xf32>
    %2 = tpu.matmul %0, %1, %cst {dimension_numbers = #tpu.dot_dimension_numbers<[1], [0], [0], [1], [0, 0, 1, 1], [], []>} : vector<16x32xbf16>, vector<32x64xbf16>, vector<16x64xf32> -> vector<16x64xf32>
    %c0_3 = arith.constant 0 : index
    %c0_4 = arith.constant 0 : index
    %3 = vector.load %arg3[%c0_3, %c0_4] : memref<64x8xf32, #tpu.memory_space<vmem>>, vector<64x8xf32>
    %cst_5 = arith.constant dense<0.000000e+00> : vector<16x8xf32>
    %4 = tpu.matmul %2, %3, %cst_5 {dimension_numbers = #tpu.dot_dimension_numbers<[1], [0], [0], [1], [0, 0, 1, 1], [], []>} : vector<16x64xf32>, vector<64x8xf32>, vector<16x8xf32> -> vector<16x8xf32>
    %c0_6 = arith.constant 0 : index
    %c0_7 = arith.constant 0 : index
    %5 = vector.load %arg5[%c0_6, %c0_7] : memref<16x8xf32, #tpu.memory_space<vmem>>, vector<16x8xf32>
    tpu.vector_store %arg5[%c0_6, %c0_7], %4 {strides = array<i32>} : memref<16x8xf32, #tpu.memory_space<vmem>>, vector<16x8xf32>,
    %6 = arith.truncf %2 : vector<16x64xf32> to vector<16x64xbf16>
    %c0_8 = arith.constant 0 : index
    %c0_9 = arith.constant 0 : index
    %7 = vector.load %arg4[%c0_8, %c0_9] : memref<16x64xbf16, #tpu.memory_space<vmem>>, vector<16x64xbf16>
    tpu.vector_store %arg4[%c0_8, %c0_9], %6 {strides = array<i32>} : memref<16x64xbf16, #tpu.memory_space<vmem>>, vector<16x64xbf16>,
    return
  }
  func.func @transform_0(%arg0: i32) -> (i32, i32) {
    %c0_i32 = arith.constant 0 : i32
    %c0_i32_0 = arith.constant 0 : i32
    return %arg0, %c0_i32 : i32, i32
  }
  func.func @transform_1(%arg0: i32) -> (i32, i32) {
    %c0_i32 = arith.constant 0 : i32
    %c0_i32_0 = arith.constant 0 : i32
    %c0_i32_1 = arith.constant 0 : i32
    return %c0_i32, %c0_i32_0 : i32, i32
  }
  func.func @transform_2(%arg0: i32) -> (i32, i32) {
    %c0_i32 = arith.constant 0 : i32
    %c0_i32_0 = arith.constant 0 : i32
    %c0_i32_1 = arith.constant 0 : i32
    return %c0_i32, %c0_i32_0 : i32, i32
  }
  func.func @transform_3(%arg0: i32) -> (i32, i32) {
    %c0_i32 = arith.constant 0 : i32
    %c0_i32_0 = arith.constant 0 : i32
    return %arg0, %c0_i32 : i32, i32
  }
  func.func @transform_4(%arg0: i32) -> (i32, i32) {
    %c0_i32 = arith.constant 0 : i32
    %c0_i32_0 = arith.constant 0 : i32
    return %arg0, %c0_i32 : i32, i32
  }
}

module attributes {stable_mosaic.version = 11 : i64} {
  func.func @_attn_project_kernel(%arg0: i32, %arg1: memref<16x32xbf16, #tpu.memory_space<vmem>>, %arg2: memref<32x64xbf16, #tpu.memory_space<vmem>>, %arg3: memref<32x8xf32, #tpu.memory_space<vmem>>, %arg4: memref<16x8xf32, #tpu.memory_space<vmem>>, %arg5: memref<1x64xf32, #tpu.memory_space<vmem>>, %arg6: memref<64x64xbf16, #tpu.memory_space<vmem>>, %arg7: memref<64x8xf32, #tpu.memory_space<vmem>>, %arg8: memref<16x64xbf16, #tpu.memory_space<vmem>>, %arg9: memref<16x8xf32, #tpu.memory_space<vmem>>) attributes {dimension_semantics = [#tpu.dimension_semantics<parallel>], iteration_bounds = array<i64: 2>, scalar_prefetch = 0 : i64, scratch_operands = 0 : i64, tpu.core_type = #tpu.core_type<tc>, window_params = [{transform_indices = @transform_0, window_bounds = array<i64: 16, 32>}, {pipeline_mode = #tpu.pipeline_mode<synchronous>, transform_indices = @transform_1, window_bounds = array<i64: 32, 64>}, {pipeline_mode = #tpu.pipeline_mode<synchronous>, transform_indices = @transform_2, window_bounds = array<i64: 32, 8>}, {transform_indices = @transform_3, window_bounds = array<i64: 16, 8>}, {pipeline_mode = #tpu.pipeline_mode<synchronous>, transform_indices = @transform_4, window_bounds = array<i64: 1, 64>}, {pipeline_mode = #tpu.pipeline_mode<synchronous>, transform_indices = @transform_5, window_bounds = array<i64: 64, 64>}, {pipeline_mode = #tpu.pipeline_mode<synchronous>, transform_indices = @transform_6, window_bounds = array<i64: 64, 8>}, {transform_indices = @transform_7, window_bounds = array<i64: 16, 64>}, {transform_indices = @transform_8, window_bounds = array<i64: 16, 8>}]} {
    %c0 = arith.constant 0 : index
    %c0_0 = arith.constant 0 : index
    %0 = vector.load %arg1[%c0, %c0_0] : memref<16x32xbf16, #tpu.memory_space<vmem>>, vector<16x32xbf16>
    %1 = arith.extf %0 : vector<16x32xbf16> to vector<16x32xf32>
    %c0_1 = arith.constant 0 : index
    %c0_2 = arith.constant 0 : index
    %2 = vector.load %arg2[%c0_1, %c0_2] : memref<32x64xbf16, #tpu.memory_space<vmem>>, vector<32x64xbf16>
    %c0_3 = arith.constant 0 : index
    %c0_4 = arith.constant 0 : index
    %3 = vector.load %arg3[%c0_3, %c0_4] : memref<32x8xf32, #tpu.memory_space<vmem>>, vector<32x8xf32>
    %c0_5 = arith.constant 0 : index
    %c0_6 = arith.constant 0 : index
    %4 = vector.load %arg4[%c0_5, %c0_6] : memref<16x8xf32, #tpu.memory_space<vmem>>, vector<16x8xf32>
    %c0_7 = arith.constant 0 : index
    %c0_8 = arith.constant 0 : index
    %5 = vector.load %arg5[%c0_7, %c0_8] : memref<1x64xf32, #tpu.memory_space<vmem>>, vector<1x64xf32>
    %6 = vector.extract_strided_slice %3 {offsets = [0, 0], sizes = [32, 4], strides = [1, 1]} : vector<32x8xf32> to vector<32x4xf32>
    %7 = tpu.transpose %6, [1, 0] : vector<32x4xf32> -> vector<4x32xf32>
    %8 = vector.extract_strided_slice %4 {offsets = [0, 4], sizes = [16, 4], strides = [1, 1]} : vector<16x8xf32> to vector<16x4xf32>
    %9 = tpu.transpose %8, [1, 0] : vector<16x4xf32> -> vector<4x16xf32>
    %10 = vector.shape_cast %9 : vector<4x16xf32> to vector<4x16x1xf32>
    %11 = vector.shape_cast %7 : vector<4x32xf32> to vector<4x1x32xf32>
    %12 = vector.broadcast %10 : vector<4x16x1xf32> to vector<4x16x32xf32>
    %13 = vector.broadcast %11 : vector<4x1x32xf32> to vector<4x16x32xf32>
    %14 = arith.addf %12, %13 : vector<4x16x32xf32>
    %cst = arith.constant 2.000000e-01 : f32
    %15 = vector.broadcast %cst : f32 to vector<4x16x32xf32>
    %16 = arith.mulf %15, %14 : vector<4x16x32xf32>
    %17 = arith.maximumf %14, %16 : vector<4x16x32xf32>
    %18 = vector.shape_cast %1 : vector<16x32xf32> to vector<1x16x32xf32>
    %19 = vector.broadcast %18 : vector<1x16x32xf32> to vector<4x16x32xf32>
    %20 = arith.addf %17, %19 : vector<4x16x32xf32>
    %cst_9 = arith.constant dense<0xFF800000> : vector<4x16xf32>
    %21 = vector.multi_reduction <maximumf>, %20, %cst_9 [2] : vector<4x16x32xf32> to vector<4x16xf32>
    %22 = vector.shape_cast %21 : vector<4x16xf32> to vector<4x16x1xf32>
    %23 = vector.broadcast %22 : vector<4x16x1xf32> to vector<4x16x32xf32>
    %24 = arith.subf %20, %23 : vector<4x16x32xf32>
    %25 = math.exp %24 : vector<4x16x32xf32>
    %cst_10 = arith.constant dense<0.000000e+00> : vector<4x16xf32>
    %26 = vector.multi_reduction <add>, %25, %cst_10 [2] : vector<4x16x32xf32> to vector<4x16xf32>
    %27 = vector.shape_cast %26 : vector<4x16xf32> to vector<4x16x1xf32>
    %28 = tpu.reciprocal %27 {approx = true} : vector<4x16x1xf32> -> vector<4x16x1xf32>
    %29 = vector.broadcast %28 : vector<4x16x1xf32> to vector<4x16x32xf32>
    %30 = arith.mulf %25, %29 : vector<4x16x32xf32>
    %31 = arith.truncf %30 : vector<4x16x32xf32> to vector<4x16x32xbf16>
    %32 = vector.extract_strided_slice %31 {offsets = [0, 0, 0], sizes = [1, 16, 32], strides = [1, 1, 1]} : vector<4x16x32xbf16> to vector<1x16x32xbf16>
    %33 = vector.shape_cast %32 : vector<1x16x32xbf16> to vector<16x32xbf16>
    %34 = vector.extract_strided_slice %2 {offsets = [0, 0], sizes = [32, 16], strides = [1, 1]} : vector<32x64xbf16> to vector<32x16xbf16>
    %cst_11 = arith.constant dense<0.000000e+00> : vector<16x16xf32>
    %35 = tpu.matmul %33, %34, %cst_11 {dimension_numbers = #tpu.dot_dimension_numbers<[1], [0], [0], [1], [0, 0, 1, 1], [], []>} : vector<16x32xbf16>, vector<32x16xbf16>, vector<16x16xf32> -> vector<16x16xf32>
    %36 = vector.extract_strided_slice %31 {offsets = [1, 0, 0], sizes = [1, 16, 32], strides = [1, 1, 1]} : vector<4x16x32xbf16> to vector<1x16x32xbf16>
    %37 = vector.shape_cast %36 : vector<1x16x32xbf16> to vector<16x32xbf16>
    %38 = vector.extract_strided_slice %2 {offsets = [0, 16], sizes = [32, 16], strides = [1, 1]} : vector<32x64xbf16> to vector<32x16xbf16>
    %cst_12 = arith.constant dense<0.000000e+00> : vector<16x16xf32>
    %39 = tpu.matmul %37, %38, %cst_12 {dimension_numbers = #tpu.dot_dimension_numbers<[1], [0], [0], [1], [0, 0, 1, 1], [], []>} : vector<16x32xbf16>, vector<32x16xbf16>, vector<16x16xf32> -> vector<16x16xf32>
    %40 = vector.extract_strided_slice %31 {offsets = [2, 0, 0], sizes = [1, 16, 32], strides = [1, 1, 1]} : vector<4x16x32xbf16> to vector<1x16x32xbf16>
    %41 = vector.shape_cast %40 : vector<1x16x32xbf16> to vector<16x32xbf16>
    %42 = vector.extract_strided_slice %2 {offsets = [0, 32], sizes = [32, 16], strides = [1, 1]} : vector<32x64xbf16> to vector<32x16xbf16>
    %cst_13 = arith.constant dense<0.000000e+00> : vector<16x16xf32>
    %43 = tpu.matmul %41, %42, %cst_13 {dimension_numbers = #tpu.dot_dimension_numbers<[1], [0], [0], [1], [0, 0, 1, 1], [], []>} : vector<16x32xbf16>, vector<32x16xbf16>, vector<16x16xf32> -> vector<16x16xf32>
    %44 = vector.extract_strided_slice %31 {offsets = [3, 0, 0], sizes = [1, 16, 32], strides = [1, 1, 1]} : vector<4x16x32xbf16> to vector<1x16x32xbf16>
    %45 = vector.shape_cast %44 : vector<1x16x32xbf16> to vector<16x32xbf16>
    %46 = vector.extract_strided_slice %2 {offsets = [0, 48], sizes = [32, 16], strides = [1, 1]} : vector<32x64xbf16> to vector<32x16xbf16>
    %cst_14 = arith.constant dense<0.000000e+00> : vector<16x16xf32>
    %47 = tpu.matmul %45, %46, %cst_14 {dimension_numbers = #tpu.dot_dimension_numbers<[1], [0], [0], [1], [0, 0, 1, 1], [], []>} : vector<16x32xbf16>, vector<32x16xbf16>, vector<16x16xf32> -> vector<16x16xf32>
    %48 = tpu.concatenate %35, %39, %43, %47 in 1 : vector<16x16xf32>, vector<16x16xf32>, vector<16x16xf32>, vector<16x16xf32> -> vector<16x64xf32>
    %cst_15 = arith.constant dense<0xFF800000> : vector<16xf32>
    %49 = vector.multi_reduction <maximumf>, %1, %cst_15 [1] : vector<16x32xf32> to vector<16xf32>
    %50 = vector.shape_cast %49 : vector<16xf32> to vector<16x1xf32>
    %cst_16 = arith.constant -1.000000e+00 : f32
    %51 = vector.broadcast %cst_16 : f32 to vector<16x1xf32>
    %52 = arith.cmpf ogt, %50, %51 : vector<16x1xf32>
    %53 = arith.extui %52 : vector<16x1xi1> to vector<16x1xi32>
    %54 = arith.sitofp %53 : vector<16x1xi32> to vector<16x1xf32>
    %55 = vector.broadcast %54 : vector<16x1xf32> to vector<16x64xf32>
    %56 = arith.mulf %48, %55 : vector<16x64xf32>
    %57 = vector.broadcast %5 : vector<1x64xf32> to vector<16x64xf32>
    %58 = arith.addf %56, %57 : vector<16x64xf32>
    %cst_17 = arith.constant 0.000000e+00 : f32
    %59 = vector.broadcast %cst_17 : f32 to vector<16x64xf32>
    %60 = arith.maximumf %58, %59 : vector<16x64xf32>
    %61 = arith.truncf %60 : vector<16x64xf32> to vector<16x64xbf16>
    %c0_18 = arith.constant 0 : index
    %c0_19 = arith.constant 0 : index
    %62 = vector.load %arg6[%c0_18, %c0_19] : memref<64x64xbf16, #tpu.memory_space<vmem>>, vector<64x64xbf16>
    %cst_20 = arith.constant dense<0.000000e+00> : vector<16x64xf32>
    %63 = tpu.matmul %61, %62, %cst_20 {dimension_numbers = #tpu.dot_dimension_numbers<[1], [0], [0], [1], [0, 0, 1, 1], [], []>} : vector<16x64xbf16>, vector<64x64xbf16>, vector<16x64xf32> -> vector<16x64xf32>
    %c0_21 = arith.constant 0 : index
    %c0_22 = arith.constant 0 : index
    %64 = vector.load %arg7[%c0_21, %c0_22] : memref<64x8xf32, #tpu.memory_space<vmem>>, vector<64x8xf32>
    %cst_23 = arith.constant dense<0.000000e+00> : vector<16x8xf32>
    %65 = tpu.matmul %63, %64, %cst_23 {dimension_numbers = #tpu.dot_dimension_numbers<[1], [0], [0], [1], [0, 0, 1, 1], [], []>} : vector<16x64xf32>, vector<64x8xf32>, vector<16x8xf32> -> vector<16x8xf32>
    %c0_24 = arith.constant 0 : index
    %c0_25 = arith.constant 0 : index
    %66 = vector.load %arg9[%c0_24, %c0_25] : memref<16x8xf32, #tpu.memory_space<vmem>>, vector<16x8xf32>
    tpu.vector_store %arg9[%c0_24, %c0_25], %65 {strides = array<i32>} : memref<16x8xf32, #tpu.memory_space<vmem>>, vector<16x8xf32>,
    %67 = arith.truncf %63 : vector<16x64xf32> to vector<16x64xbf16>
    %c0_26 = arith.constant 0 : index
    %c0_27 = arith.constant 0 : index
    %68 = vector.load %arg8[%c0_26, %c0_27] : memref<16x64xbf16, #tpu.memory_space<vmem>>, vector<16x64xbf16>
    tpu.vector_store %arg8[%c0_26, %c0_27], %67 {strides = array<i32>} : memref<16x64xbf16, #tpu.memory_space<vmem>>, vector<16x64xbf16>,
    return
  }
  func.func @transform_0(%arg0: i32) -> (i32, i32) {
    %c0_i32 = arith.constant 0 : i32
    %c0_i32_0 = arith.constant 0 : i32
    return %arg0, %c0_i32 : i32, i32
  }
  func.func @transform_1(%arg0: i32) -> (i32, i32) {
    %c0_i32 = arith.constant 0 : i32
    %c0_i32_0 = arith.constant 0 : i32
    %c0_i32_1 = arith.constant 0 : i32
    return %c0_i32, %c0_i32_0 : i32, i32
  }
  func.func @transform_2(%arg0: i32) -> (i32, i32) {
    %c0_i32 = arith.constant 0 : i32
    %c0_i32_0 = arith.constant 0 : i32
    %c0_i32_1 = arith.constant 0 : i32
    return %c0_i32, %c0_i32_0 : i32, i32
  }
  func.func @transform_3(%arg0: i32) -> (i32, i32) {
    %c0_i32 = arith.constant 0 : i32
    %c0_i32_0 = arith.constant 0 : i32
    return %arg0, %c0_i32 : i32, i32
  }
  func.func @transform_4(%arg0: i32) -> (i32, i32) {
    %c0_i32 = arith.constant 0 : i32
    %c0_i32_0 = arith.constant 0 : i32
    %c0_i32_1 = arith.constant 0 : i32
    return %c0_i32, %c0_i32_0 : i32, i32
  }
  func.func @transform_5(%arg0: i32) -> (i32, i32) {
    %c0_i32 = arith.constant 0 : i32
    %c0_i32_0 = arith.constant 0 : i32
    %c0_i32_1 = arith.constant 0 : i32
    return %c0_i32, %c0_i32_0 : i32, i32
  }
  func.func @transform_6(%arg0: i32) -> (i32, i32) {
    %c0_i32 = arith.constant 0 : i32
    %c0_i32_0 = arith.constant 0 : i32
    %c0_i32_1 = arith.constant 0 : i32
    return %c0_i32, %c0_i32_0 : i32, i32
  }
  func.func @transform_7(%arg0: i32) -> (i32, i32) {
    %c0_i32 = arith.constant 0 : i32
    %c0_i32_0 = arith.constant 0 : i32
    return %arg0, %c0_i32 : i32, i32
  }
  func.func @transform_8(%arg0: i32) -> (i32, i32) {
    %c0_i32 = arith.constant 0 : i32
    %c0_i32_0 = arith.constant 0 : i32
    return %arg0, %c0_i32 : i32, i32
  }
}

module attributes {stable_mosaic.version = 11 : i64} {
  func.func @_attn_pool_classify_kernel(%arg0: i32, %arg1: memref<16x32xbf16, #tpu.memory_space<vmem>>, %arg2: memref<32x64xbf16, #tpu.memory_space<vmem>>, %arg3: memref<32x8xf32, #tpu.memory_space<vmem>>, %arg4: memref<16x8xf32, #tpu.memory_space<vmem>>, %arg5: memref<1x64xf32, #tpu.memory_space<vmem>>, %arg6: memref<16x4xbf16, #tpu.memory_space<vmem>>, %arg7: memref<64x128xf32, #tpu.memory_space<vmem>>, %arg8: memref<1x128xf32, #tpu.memory_space<vmem>>, %arg9: memref<4x128xf32, #tpu.memory_space<vmem>>, %arg10: memref<4x64xf32, #tpu.memory_space<vmem>>) attributes {dimension_semantics = [#tpu.dimension_semantics<arbitrary>], iteration_bounds = array<i64: 2>, scalar_prefetch = 0 : i64, scratch_operands = 1 : i64, tpu.core_type = #tpu.core_type<tc>, window_params = [{transform_indices = @transform_0, window_bounds = array<i64: 16, 32>}, {pipeline_mode = #tpu.pipeline_mode<synchronous>, transform_indices = @transform_1, window_bounds = array<i64: 32, 64>}, {pipeline_mode = #tpu.pipeline_mode<synchronous>, transform_indices = @transform_2, window_bounds = array<i64: 32, 8>}, {transform_indices = @transform_3, window_bounds = array<i64: 16, 8>}, {pipeline_mode = #tpu.pipeline_mode<synchronous>, transform_indices = @transform_4, window_bounds = array<i64: 1, 64>}, {transform_indices = @transform_5, window_bounds = array<i64: 16, 4>}, {pipeline_mode = #tpu.pipeline_mode<synchronous>, transform_indices = @transform_6, window_bounds = array<i64: 64, 128>}, {pipeline_mode = #tpu.pipeline_mode<synchronous>, transform_indices = @transform_7, window_bounds = array<i64: 1, 128>}, {pipeline_mode = #tpu.pipeline_mode<synchronous>, transform_indices = @transform_8, window_bounds = array<i64: 4, 128>}]} {
    %c0_i32 = arith.constant 0 : i32
    %0 = arith.cmpi eq, %arg0, %c0_i32 : i32
    %1 = arith.extui %0 : i1 to i32
    %c0_i32_0 = arith.constant 0 : i32
    %2 = arith.cmpi ne, %1, %c0_i32_0 : i32
    scf.if %2 {
      %cst_27 = arith.constant 0.000000e+00 : f32
      %73 = vector.broadcast %cst_27 : f32 to vector<4x64xf32>
      %c0_28 = arith.constant 0 : index
      %c0_29 = arith.constant 0 : index
      %74 = vector.load %arg10[%c0_28, %c0_29] : memref<4x64xf32, #tpu.memory_space<vmem>>, vector<4x64xf32>
      tpu.vector_store %arg10[%c0_28, %c0_29], %73 {strides = array<i32>} : memref<4x64xf32, #tpu.memory_space<vmem>>, vector<4x64xf32>,
    } else {
    }
    %c0 = arith.constant 0 : index
    %c0_1 = arith.constant 0 : index
    %3 = vector.load %arg1[%c0, %c0_1] : memref<16x32xbf16, #tpu.memory_space<vmem>>, vector<16x32xbf16>
    %4 = arith.extf %3 : vector<16x32xbf16> to vector<16x32xf32>
    %c0_2 = arith.constant 0 : index
    %c0_3 = arith.constant 0 : index
    %5 = vector.load %arg2[%c0_2, %c0_3] : memref<32x64xbf16, #tpu.memory_space<vmem>>, vector<32x64xbf16>
    %c0_4 = arith.constant 0 : index
    %c0_5 = arith.constant 0 : index
    %6 = vector.load %arg3[%c0_4, %c0_5] : memref<32x8xf32, #tpu.memory_space<vmem>>, vector<32x8xf32>
    %c0_6 = arith.constant 0 : index
    %c0_7 = arith.constant 0 : index
    %7 = vector.load %arg4[%c0_6, %c0_7] : memref<16x8xf32, #tpu.memory_space<vmem>>, vector<16x8xf32>
    %c0_8 = arith.constant 0 : index
    %c0_9 = arith.constant 0 : index
    %8 = vector.load %arg5[%c0_8, %c0_9] : memref<1x64xf32, #tpu.memory_space<vmem>>, vector<1x64xf32>
    %9 = vector.extract_strided_slice %6 {offsets = [0, 0], sizes = [32, 4], strides = [1, 1]} : vector<32x8xf32> to vector<32x4xf32>
    %10 = tpu.transpose %9, [1, 0] : vector<32x4xf32> -> vector<4x32xf32>
    %11 = vector.extract_strided_slice %7 {offsets = [0, 4], sizes = [16, 4], strides = [1, 1]} : vector<16x8xf32> to vector<16x4xf32>
    %12 = tpu.transpose %11, [1, 0] : vector<16x4xf32> -> vector<4x16xf32>
    %13 = vector.shape_cast %12 : vector<4x16xf32> to vector<4x16x1xf32>
    %14 = vector.shape_cast %10 : vector<4x32xf32> to vector<4x1x32xf32>
    %15 = vector.broadcast %13 : vector<4x16x1xf32> to vector<4x16x32xf32>
    %16 = vector.broadcast %14 : vector<4x1x32xf32> to vector<4x16x32xf32>
    %17 = arith.addf %15, %16 : vector<4x16x32xf32>
    %cst = arith.constant 2.000000e-01 : f32
    %18 = vector.broadcast %cst : f32 to vector<4x16x32xf32>
    %19 = arith.mulf %18, %17 : vector<4x16x32xf32>
    %20 = arith.maximumf %17, %19 : vector<4x16x32xf32>
    %21 = vector.shape_cast %4 : vector<16x32xf32> to vector<1x16x32xf32>
    %22 = vector.broadcast %21 : vector<1x16x32xf32> to vector<4x16x32xf32>
    %23 = arith.addf %20, %22 : vector<4x16x32xf32>
    %cst_10 = arith.constant dense<0xFF800000> : vector<4x16xf32>
    %24 = vector.multi_reduction <maximumf>, %23, %cst_10 [2] : vector<4x16x32xf32> to vector<4x16xf32>
    %25 = vector.shape_cast %24 : vector<4x16xf32> to vector<4x16x1xf32>
    %26 = vector.broadcast %25 : vector<4x16x1xf32> to vector<4x16x32xf32>
    %27 = arith.subf %23, %26 : vector<4x16x32xf32>
    %28 = math.exp %27 : vector<4x16x32xf32>
    %cst_11 = arith.constant dense<0.000000e+00> : vector<4x16xf32>
    %29 = vector.multi_reduction <add>, %28, %cst_11 [2] : vector<4x16x32xf32> to vector<4x16xf32>
    %30 = vector.shape_cast %29 : vector<4x16xf32> to vector<4x16x1xf32>
    %31 = tpu.reciprocal %30 {approx = true} : vector<4x16x1xf32> -> vector<4x16x1xf32>
    %32 = vector.broadcast %31 : vector<4x16x1xf32> to vector<4x16x32xf32>
    %33 = arith.mulf %28, %32 : vector<4x16x32xf32>
    %34 = arith.truncf %33 : vector<4x16x32xf32> to vector<4x16x32xbf16>
    %35 = vector.extract_strided_slice %34 {offsets = [0, 0, 0], sizes = [1, 16, 32], strides = [1, 1, 1]} : vector<4x16x32xbf16> to vector<1x16x32xbf16>
    %36 = vector.shape_cast %35 : vector<1x16x32xbf16> to vector<16x32xbf16>
    %37 = vector.extract_strided_slice %5 {offsets = [0, 0], sizes = [32, 16], strides = [1, 1]} : vector<32x64xbf16> to vector<32x16xbf16>
    %cst_12 = arith.constant dense<0.000000e+00> : vector<16x16xf32>
    %38 = tpu.matmul %36, %37, %cst_12 {dimension_numbers = #tpu.dot_dimension_numbers<[1], [0], [0], [1], [0, 0, 1, 1], [], []>} : vector<16x32xbf16>, vector<32x16xbf16>, vector<16x16xf32> -> vector<16x16xf32>
    %39 = vector.extract_strided_slice %34 {offsets = [1, 0, 0], sizes = [1, 16, 32], strides = [1, 1, 1]} : vector<4x16x32xbf16> to vector<1x16x32xbf16>
    %40 = vector.shape_cast %39 : vector<1x16x32xbf16> to vector<16x32xbf16>
    %41 = vector.extract_strided_slice %5 {offsets = [0, 16], sizes = [32, 16], strides = [1, 1]} : vector<32x64xbf16> to vector<32x16xbf16>
    %cst_13 = arith.constant dense<0.000000e+00> : vector<16x16xf32>
    %42 = tpu.matmul %40, %41, %cst_13 {dimension_numbers = #tpu.dot_dimension_numbers<[1], [0], [0], [1], [0, 0, 1, 1], [], []>} : vector<16x32xbf16>, vector<32x16xbf16>, vector<16x16xf32> -> vector<16x16xf32>
    %43 = vector.extract_strided_slice %34 {offsets = [2, 0, 0], sizes = [1, 16, 32], strides = [1, 1, 1]} : vector<4x16x32xbf16> to vector<1x16x32xbf16>
    %44 = vector.shape_cast %43 : vector<1x16x32xbf16> to vector<16x32xbf16>
    %45 = vector.extract_strided_slice %5 {offsets = [0, 32], sizes = [32, 16], strides = [1, 1]} : vector<32x64xbf16> to vector<32x16xbf16>
    %cst_14 = arith.constant dense<0.000000e+00> : vector<16x16xf32>
    %46 = tpu.matmul %44, %45, %cst_14 {dimension_numbers = #tpu.dot_dimension_numbers<[1], [0], [0], [1], [0, 0, 1, 1], [], []>} : vector<16x32xbf16>, vector<32x16xbf16>, vector<16x16xf32> -> vector<16x16xf32>
    %47 = vector.extract_strided_slice %34 {offsets = [3, 0, 0], sizes = [1, 16, 32], strides = [1, 1, 1]} : vector<4x16x32xbf16> to vector<1x16x32xbf16>
    %48 = vector.shape_cast %47 : vector<1x16x32xbf16> to vector<16x32xbf16>
    %49 = vector.extract_strided_slice %5 {offsets = [0, 48], sizes = [32, 16], strides = [1, 1]} : vector<32x64xbf16> to vector<32x16xbf16>
    %cst_15 = arith.constant dense<0.000000e+00> : vector<16x16xf32>
    %50 = tpu.matmul %48, %49, %cst_15 {dimension_numbers = #tpu.dot_dimension_numbers<[1], [0], [0], [1], [0, 0, 1, 1], [], []>} : vector<16x32xbf16>, vector<32x16xbf16>, vector<16x16xf32> -> vector<16x16xf32>
    %51 = tpu.concatenate %38, %42, %46, %50 in 1 : vector<16x16xf32>, vector<16x16xf32>, vector<16x16xf32>, vector<16x16xf32> -> vector<16x64xf32>
    %cst_16 = arith.constant dense<0xFF800000> : vector<16xf32>
    %52 = vector.multi_reduction <maximumf>, %4, %cst_16 [1] : vector<16x32xf32> to vector<16xf32>
    %53 = vector.shape_cast %52 : vector<16xf32> to vector<16x1xf32>
    %cst_17 = arith.constant -1.000000e+00 : f32
    %54 = vector.broadcast %cst_17 : f32 to vector<16x1xf32>
    %55 = arith.cmpf ogt, %53, %54 : vector<16x1xf32>
    %56 = arith.extui %55 : vector<16x1xi1> to vector<16x1xi32>
    %57 = arith.sitofp %56 : vector<16x1xi32> to vector<16x1xf32>
    %58 = vector.broadcast %57 : vector<16x1xf32> to vector<16x64xf32>
    %59 = arith.mulf %51, %58 : vector<16x64xf32>
    %60 = vector.broadcast %8 : vector<1x64xf32> to vector<16x64xf32>
    %61 = arith.addf %59, %60 : vector<16x64xf32>
    %cst_18 = arith.constant 0.000000e+00 : f32
    %62 = vector.broadcast %cst_18 : f32 to vector<16x64xf32>
    %63 = arith.maximumf %61, %62 : vector<16x64xf32>
    %c0_19 = arith.constant 0 : index
    %c0_20 = arith.constant 0 : index
    %64 = vector.load %arg10[%c0_19, %c0_20] : memref<4x64xf32, #tpu.memory_space<vmem>>, vector<4x64xf32>
    %c0_21 = arith.constant 0 : index
    %c0_22 = arith.constant 0 : index
    %65 = vector.load %arg6[%c0_21, %c0_22] : memref<16x4xbf16, #tpu.memory_space<vmem>>, vector<16x4xbf16>
    %66 = arith.truncf %63 : vector<16x64xf32> to vector<16x64xbf16>
    %cst_23 = arith.constant dense<0.000000e+00> : vector<4x64xf32>
    %67 = tpu.matmul %65, %66, %cst_23 {dimension_numbers = #tpu.dot_dimension_numbers<[0], [0], [1], [1], [0, 1, 1, 1], [], []>} : vector<16x4xbf16>, vector<16x64xbf16>, vector<4x64xf32> -> vector<4x64xf32>
    %68 = arith.addf %64, %67 : vector<4x64xf32>
    %c0_24 = arith.constant 0 : index
    %c0_25 = arith.constant 0 : index
    %69 = vector.load %arg10[%c0_24, %c0_25] : memref<4x64xf32, #tpu.memory_space<vmem>>, vector<4x64xf32>
    tpu.vector_store %arg10[%c0_24, %c0_25], %68 {strides = array<i32>} : memref<4x64xf32, #tpu.memory_space<vmem>>, vector<4x64xf32>,
    %c1_i32 = arith.constant 1 : i32
    %70 = arith.cmpi eq, %arg0, %c1_i32 : i32
    %71 = arith.extui %70 : i1 to i32
    %c0_i32_26 = arith.constant 0 : i32
    %72 = arith.cmpi ne, %71, %c0_i32_26 : i32
    scf.if %72 {
      %c0_27 = arith.constant 0 : index
      %c0_28 = arith.constant 0 : index
      %73 = vector.load %arg10[%c0_27, %c0_28] : memref<4x64xf32, #tpu.memory_space<vmem>>, vector<4x64xf32>
      %c0_29 = arith.constant 0 : index
      %c0_30 = arith.constant 0 : index
      %74 = vector.load %arg7[%c0_29, %c0_30] : memref<64x128xf32, #tpu.memory_space<vmem>>, vector<64x128xf32>
      %cst_31 = arith.constant dense<0.000000e+00> : vector<4x128xf32>
      %75 = tpu.matmul %73, %74, %cst_31 {dimension_numbers = #tpu.dot_dimension_numbers<[1], [0], [0], [1], [0, 0, 1, 1], [], []>} : vector<4x64xf32>, vector<64x128xf32>, vector<4x128xf32> -> vector<4x128xf32>
      %c0_32 = arith.constant 0 : index
      %c0_33 = arith.constant 0 : index
      %76 = vector.load %arg8[%c0_32, %c0_33] : memref<1x128xf32, #tpu.memory_space<vmem>>, vector<1x128xf32>
      %77 = vector.broadcast %76 : vector<1x128xf32> to vector<4x128xf32>
      %78 = arith.addf %75, %77 : vector<4x128xf32>
      %c0_34 = arith.constant 0 : index
      %c0_35 = arith.constant 0 : index
      %79 = vector.load %arg9[%c0_34, %c0_35] : memref<4x128xf32, #tpu.memory_space<vmem>>, vector<4x128xf32>
      tpu.vector_store %arg9[%c0_34, %c0_35], %78 {strides = array<i32>} : memref<4x128xf32, #tpu.memory_space<vmem>>, vector<4x128xf32>,
    } else {
    }
    return
  }
  func.func @transform_0(%arg0: i32) -> (i32, i32) {
    %c0_i32 = arith.constant 0 : i32
    %c0_i32_0 = arith.constant 0 : i32
    return %arg0, %c0_i32 : i32, i32
  }
  func.func @transform_1(%arg0: i32) -> (i32, i32) {
    %c0_i32 = arith.constant 0 : i32
    %c0_i32_0 = arith.constant 0 : i32
    %c0_i32_1 = arith.constant 0 : i32
    return %c0_i32, %c0_i32_0 : i32, i32
  }
  func.func @transform_2(%arg0: i32) -> (i32, i32) {
    %c0_i32 = arith.constant 0 : i32
    %c0_i32_0 = arith.constant 0 : i32
    %c0_i32_1 = arith.constant 0 : i32
    return %c0_i32, %c0_i32_0 : i32, i32
  }
  func.func @transform_3(%arg0: i32) -> (i32, i32) {
    %c0_i32 = arith.constant 0 : i32
    %c0_i32_0 = arith.constant 0 : i32
    return %arg0, %c0_i32 : i32, i32
  }
  func.func @transform_4(%arg0: i32) -> (i32, i32) {
    %c0_i32 = arith.constant 0 : i32
    %c0_i32_0 = arith.constant 0 : i32
    %c0_i32_1 = arith.constant 0 : i32
    return %c0_i32, %c0_i32_0 : i32, i32
  }
  func.func @transform_5(%arg0: i32) -> (i32, i32) {
    %c0_i32 = arith.constant 0 : i32
    %c0_i32_0 = arith.constant 0 : i32
    return %arg0, %c0_i32 : i32, i32
  }
  func.func @transform_6(%arg0: i32) -> (i32, i32) {
    %c0_i32 = arith.constant 0 : i32
    %c0_i32_0 = arith.constant 0 : i32
    %c0_i32_1 = arith.constant 0 : i32
    return %c0_i32, %c0_i32_0 : i32, i32
  }
  func.func @transform_7(%arg0: i32) -> (i32, i32) {
    %c0_i32 = arith.constant 0 : i32
    %c0_i32_0 = arith.constant 0 : i32
    %c0_i32_1 = arith.constant 0 : i32
    return %c0_i32, %c0_i32_0 : i32, i32
  }
  func.func @transform_8(%arg0: i32) -> (i32, i32) {
    %c0_i32 = arith.constant 0 : i32
    %c0_i32_0 = arith.constant 0 : i32
    %c0_i32_1 = arith.constant 0 : i32
    return %c0_i32, %c0_i32_0 : i32, i32
  }
}

</mosaic_0001>

<bundles_post_ra>
// kernel: gat_graph_classifier.3
= control target key start
LH: loop header
LB: loop body
LE: loop exit
PB: predicated region body
PF: predicated region fallthrough
CT: control target
= control target key end

     0   :  { %s605_s15 = smov 0   ;;  %s659_s0 = inlined_call_operand.vmem [shape: bf16[32,32], index: 0, kind: input, shape index: {}]   ;;  %s660_s1 = inlined_call_operand.vmem [shape: bf16[32,64], index: 1, kind: input, shape index: {}]   ;;  %s661_s2 = inlined_call_operand.vmem [shape: f32[64,8], index: 2, kind: input, shape index: {}]   ;;  %s662_s3 = inlined_call_operand.vmem [shape: bf16[32,64], index: 3, kind: output, shape index: {0}]   ;;  %s663_s4 = inlined_call_operand.vmem [shape: f32[32,8], index: 4, kind: output, shape index: {1}]  }
   0x1 LB: > { %s478_s16 = sadd.s32 4294967295, %s576_s15   ;;  %p482_p0 = scmp.ge.s32.totalorder %s576_s15, 1  ;;  %s576_s15 = sphi %s605_s15, %s15_s15  }
   0x2   : > { %p166_p1 = scmp.lt.s32.totalorder %s576_s15, 3 }
   0x4   : > { %p167_p2 = pnand %p482_p0, %p166_p1 }
   0x5   : > { %v567_v0 = vld [vmem:[%s660_s1] sm:$0xff] (!%p167_p2)   ;;  %v578_v1 = vmov (!%p167_p2), 0.0   ;;  %v568_v2 = vld [vmem:[%s660_s1 + $0x8] sm:$0xff] (!%p167_p2)   ;;  %vm579_vm0 = vmmov (!%p167_p2), 0   ;;  %s483_s21 = sshll.u32 (!%p167_p2), %s478_s16, 1  ;;  %v286_v5 = vld [vmem:[%s661_s2 + $0x10] sm:$0xff] (!%p167_p2) }
   0x6   : > { %170 = sbr.rel (%p167_p2) target bundleno = 445 (0x1bd), region = 32  ;;  %514 = vmatprep.subr.bf16.mxu0 (!%p167_p2), %v578_v1  ;;  %518 = vmatprep.mubr.msk.bf16.mxu0 (!%p167_p2), %vm579_vm0, %v578_v1  ;;  %v284_v3 = vld [vmem:[%s661_s2] sm:$0xff] (!%p167_p2)  ;;  %v285_v4 = vld [vmem:[%s661_s2 + $0x8] sm:$0xff] (!%p167_p2)  ;;  %p198_p3 = scmp.lt.s32.totalorder (!%p167_p2), %s483_s21, 3  ;;  %v287_v7 = vld [vmem:[%s661_s2 + $0x18] sm:$0xff] (!%p167_p2)  ;;  %vm239_vm1 = vcmask (!%p167_p2), 261120  }
   0x7   : > { %515 = vmatpush3.bf16.msra.mxu0 (!%p167_p2), %v567_v0  ;;  %v541_v6 = vpack.c.bf16 (!%p167_p2), %v285_v4, %v284_v3  ;;  %v545_v8 = vpack.c.bf16 (!%p167_p2), %v287_v7, %v286_v5  ;;  %v288_v9 = vld [vmem:[%s661_s2 + $0x20] sm:$0xff] (!%p167_p2)  ;;  %v289_v10 = vld [vmem:[%s661_s2 + $0x28] sm:$0xff] (!%p167_p2)  ;;  %v290_v12 = vld [vmem:[%s661_s2 + $0x30] sm:$0xff] (!%p167_p2)  ;;  %vm292_vm2 = vcmask (!%p167_p2), 523264   ;;  %vm385_vm3 = vcmask (!%p167_p2), 519168  }
   0x8   : > { %516 = vmatprep.subr.bf16.mxu0 (!%p167_p2), %v578_v1  ;;  %v549_v11 = vpack.c.bf16 (!%p167_p2), %v289_v10, %v288_v9  ;;  %v291_v13 = vld [vmem:[%s661_s2 + $0x38] sm:$0xff] (!%p167_p2)  ;;  %vm374_vm4 = vcmask (!%p167_p2), 64512  }
   0x9   : > { %542 = vmatprep.subr.bf16.mxu1 (!%p167_p2), %v541_v6  ;;  %v553_v15 = vpack.c.bf16 (!%p167_p2), %v291_v13, %v290_v12 }
   0xa   : > { %544 = vmatpush3.bf16.msra.mxu1 (!%p167_p2), %v541_v6 }
   0xb   : > { %517 = vmatpush3.bf16.msra.mxu0 (!%p167_p2), %v568_v2  ;;  %546 = vmatprep.subr.bf16.mxu1 (!%p167_p2), %v545_v8 }
   0xd   : > { %s665_s21 = smov (!%p198_p3, %s483_s21), 3 }
   0xe   : > { %s484_s8 = sshll.u32 %s665_s21, 2  ;;  %548 = vmatpush3.bf16.msra.mxu1 %v545_v8  ;;  %s488_s20 = sshll.u32 %s665_s21, 3 }
   0xf   : > { %s201_s11 = scalar_lea.vmem %s659_s0, %s484_s8  ;;  %550 = vmatprep.subr.bf16.mxu1 %v549_v11  ;;  %s207_s19 = scalar_lea.vmem %s662_s3, %s484_s8 }
  0x10   : > { %v569_v14 = vld [vmem:[%s201_s11] sm:$0xff]   ;;  %s213_s24 = scalar_lea.vmem %s663_s4, %s488_s20 }
  0x11   : > { %519 = vmatmul.mubr.msk.bf16.vlgmr.msra.gmra.mrb[0].mxu0 %vm239_vm1, %v569_v14 }
  0x12   : > { %552 = vmatpush3.bf16.msra.mxu1 %v549_v11 }
  0x13   : > { %554 = vmatprep.subr.bf16.mxu1 %v553_v15 }
  0x16   : > { %556 = vmatpush3.bf16.msra.mxu1 %v553_v15 }
  0xe4   : > { %v277_v16 = vpop.f32.mrb[0].mxu0 }
  0xe5   : > { %v499_v17 = vpack.c.bf16 %v277_v16, %v277_v16  ;;  %v520_v18 = vpop.f32.mrb[1].mxu0  ;;  %538 = vmatprep.mubr.msk.f32.mxu1 %vm292_vm2, %v277_v16 }
  0xe6   : > { %v280_v19 = vpop.f32.mrb[2].mxu0 }
  0xe7   : > { %386 = vst.msk [vmem:[%s207_s19] sm:$0xf] %vm385_vm3, %v499_v17  ;;  %v500_v20 = vpack.c.bf16 %v280_v19, %v280_v19  ;;  %v521_v21 = vpop.f32.mrb[3].mxu0  ;;  %539 = vmatmul.mubr.msk.f32.vlgmr.msra.gmra.mrb[0].mxu1 %vm292_vm2, %v280_v19 }
  0xe9   : > { %387 = vst.msk [vmem:[%s207_s19 + $0x4] sm:$0xf] %vm385_vm3, %v500_v20 }
 0x1ba   : > { %v540_v22 = vpop.f32.mrb[0].mxu1 }
 0x1bb   : > { %v365_v23 = vpop.f32.mrb[1].mxu1  ;;  %376 = vst.msk [vmem:[%s213_s24 + $0x8] sm:$0xff] %vm374_vm4, %v540_v22 }
 0x1bc   : > { %375 = vst.msk [vmem:[%s213_s24] sm:$0xff] %vm374_vm4, %v365_v23 }
 0x1bd PF: > { %s15_s15 = sadd.s32 1, %s576_s15  }
 0x1be   : > { %p12_p4 = scmp.ge.s32.totalorder %s15_s15, 4  }
 0x1c0   :  { %14 = sbr.rel (!%p12_p4) target bundleno = 1 (0x1), region = 74 }

// kernel: gat_graph_classifier.4
= control target key start
LH: loop header
LB: loop body
LE: loop exit
PB: predicated region body
PF: predicated region fallthrough
CT: control target
= control target key end

     0   :  { %s1456_s27 = smov 0   ;;  %s1643_s0 = inlined_call_operand.vmem [shape: bf16[32,32], index: 0, kind: input, shape index: {}]   ;;  %s1644_s1 = inlined_call_operand.vmem [shape: bf16[32,64], index: 1, kind: input, shape index: {}]   ;;  %s1645_s2 = inlined_call_operand.vmem [shape: f32[32,8], index: 2, kind: input, shape index: {}, may-alias: {2,3}]   ;;  %s1646_s3 = inlined_call_operand.vmem [shape: f32[32,8], index: 3, kind: input, shape index: {}, may-alias: {2,3}]   ;;  %s1647_s4 = inlined_call_operand.vmem [shape: f32[1,64], index: 4, kind: input, shape index: {}]   ;;  %s1648_s5 = inlined_call_operand.vmem [shape: bf16[64,64], index: 5, kind: input, shape index: {}]   ;;  %s1649_s6 = inlined_call_operand.vmem [shape: f32[64,8], index: 6, kind: input, shape index: {}]   ;;  %s1650_s7 = inlined_call_operand.vmem [shape: bf16[32,64], index: 7, kind: output, shape index: {0}]   ;;  %s1651_s8 = inlined_call_operand.vmem [shape: f32[32,8], index: 8, kind: output, shape index: {1}]  }
   0x1 LB: > { %s1192_s28 = sadd.s32 4294967295, %s1399_s27   ;;  %p1196_p0 = scmp.ge.s32.totalorder %s1399_s27, 1  ;;  %s1399_s27 = sphi %s1456_s27, %s19_s27  }
   0x2   : > { %p277_p1 = scmp.lt.s32.totalorder %s1399_s27, 3 }
   0x4   : > { %p278_p2 = pnand %p1196_p0, %p277_p1 }
   0x5   : > { %s1197_s29 = sshll.u32 (!%p278_p2), %s1192_s28, 1  ;;  %s1401_s12 = smov (!%p278_p2), 124   ;;  %v433_v4 = vlaneseq (!%p278_p2)  ;;  %v354_v15 = vld [vmem:[%s1645_s2] sm:$0xff] (!%p278_p2)  ;;  %v355_v16 = vld [vmem:[%s1645_s2 + $0x8] sm:$0xff] (!%p278_p2)  ;;  %v356_v17 = vld [vmem:[%s1645_s2 + $0x10] sm:$0xff] (!%p278_p2)  ;;  %vm554_vm0 = vcmask (!%p278_p2), 261120  }
   0x6   : > { %281 = sbr.rel (%p278_p2) target bundleno = 1615 (0x64f), region = 48  ;;  %p322_p3 = scmp.lt.s32.totalorder (!%p278_p2), %s1197_s29, 3  ;;  %v357_v18 = vld [vmem:[%s1645_s2 + $0x18] sm:$0xff] (!%p278_p2)  ;;  %v1402_v24 = vmov (!%p278_p2), 1966171168   ;;  %v1355_v60 = vld [vmem:[%s1644_s1] sm:$0xff] (!%p278_p2)  }
   0x7   : > { %v434_v5 = vshrl.u32 (!%p278_p2), %v433_v4, 7  ;;  %v479_v25 = vunpack.c.l.s4 (!%p278_p2), %v1402_v24  ;;  %s1403_s28 = smov (!%p278_p2), 112   ;;  %v1404_v61 = vmov (!%p278_p2), 0.0   ;;  %vm1407_vm1 = vmmov (!%p278_p2), 0   ;;  %s1408_s15 = smov (!%p278_p2), 16  }
   0x8   : > { %1266 = vmatprep.subr.bf16.mxu1 (!%p278_p2), %v1404_v61  ;;  %1258 = vmatprep.subr.bf16.mxu0 (!%p278_p2), %v1404_v61  ;;  %s1409_s20 = smov (!%p278_p2), 32   ;;  %s1410_s13 = smov (!%p278_p2), 48   ;;  %vm877_vm2 = vcmask (!%p278_p2), 130048   ;;  %vm882_vm4 = vcmask (!%p278_p2), 392192   ;;  %vm942_vm6 = vcmask (!%p278_p2), 523264   ;;  %vm1087_vm7 = vcmask (!%p278_p2), 519168  }
   0x9   : > { %v1472_v6 = vsub.s32 (!%p278_p2), 0, %v434_v5  ;;  %v446_v9 = vsub.s32 (!%p278_p2), 1, %v434_v5  ;;  %v457_v11 = vsub.s32 (!%p278_p2), 2, %v434_v5  ;;  %v468_v13 = vsub.s32 (!%p278_p2), 3, %v434_v5  ;;  %1259 = vmatpush3.bf16.msra.mxu0 (!%p278_p2), %v1355_v60  ;;  %1262 = vmatprep.mubr.msk.bf16.mxu0 (!%p278_p2), %vm1407_vm1, %v1404_v61 }
   0xa   : > { %v480_v27 = vunpack.c.0.s8 (!%p278_p2), %v479_v25  ;;  %1260 = vmatprep.subr.bf16.mxu0 (!%p278_p2), %v1404_v61  ;;  %1270 = vmatprep.mubr.msk.bf16.mxu1 (!%p278_p2), %vm1407_vm1, %v1404_v61  ;;  %vm1076_vm8 = vcmask (!%p278_p2), 64512  }
   0xc   : > { %v483_v29 = vsub.s32 (!%p278_p2), %v480_v27, %v434_v5 }
   0xd   : > { %s1653_s29 = smov (!%p322_p3, %s1197_s29), 3 }
   0xe   : > { %s1200_s30 = sshll.u32 %s1653_s29, 3  ;;  %s1198_s21 = sshll.u32 %s1653_s29, 2 }
   0xf   : > { %s331_s11 = scalar_lea.vmem %s1646_s3, %s1200_s30  ;;  %s325_s24 = scalar_lea.vmem %s1643_s0, %s1198_s21 }
  0x10   : > { %v358_v0 = vld [vmem:[%s331_s11] sm:$0xff]  ;;  %v359_v1 = vld [vmem:[%s331_s11 + $0x8] sm:$0xff]  ;;  %s1405_s11 = smov 96  }
  0x11   : > { %395 = vrot.lane.b32.xlu0 %v358_v0, %s1401_s12  ;;  %v1228_v36 = vld [vmem:[%s325_s24] sm:$0xff]  }
  0x12   : > { %v1495_v42 = vunpack.c.l.bf16 %v1228_v36  ;;  %v1498_v47 = vunpack.c.h.bf16 %v1228_v36 }
  0x15   : > { %397 = vrot.lane.b32.xlu0 %v359_v1, %s1401_s12  ;;  %s1406_s12 = smov 80  }
  0x83   : > { %v396_v2 = vpop.permute.xlu0 %395 }
  0x84   : > { %401 = vxpose.xlu1.b32.start [1/2] (short) (narrow) %v396_v2, 8 }
  0x87   : > { %v398_v3 = vpop.permute.xlu0 %397 }
  0x88   : > { %402 = vxpose.xlu1.b32.end [2/2] (short) (narrow) %v398_v3, 8 }
 0x104   : > { %v417_v7 = vpop.trf.xlu1 }
 0x105   : > { %v436_v8 = vrot.slane %v417_v7, %v1472_v6  ;;  %v447_v10 = vrot.slane %v417_v7, %v446_v9  ;;  %v458_v12 = vrot.slane %v417_v7, %v457_v11  ;;  %v469_v14 = vrot.slane %v417_v7, %v468_v13 }
 0x107   : > { %442 = vbcast.lane.b32.xlu1 %v436_v8, 264  ;;  %438 = vbcast.lane.b32.xlu0 %v436_v8, 256 }
 0x10b   : > { %449 = vbcast.lane.b32.xlu0 %v447_v10, 256 }
 0x10f   : > { %453 = vbcast.lane.b32.xlu0 %v447_v10, 264 }
 0x113   : > { %460 = vbcast.lane.b32.xlu0 %v458_v12, 256 }
 0x117   : > { %464 = vbcast.lane.b32.xlu0 %v458_v12, 264 }
 0x11b   : > { %471 = vbcast.lane.b32.xlu0 %v469_v14, 256 }
 0x11f   : > { %475 = vbcast.lane.b32.xlu0 %v469_v14, 264 }
 0x13d   : > { %361 = vxpose.xlu0.b32.start [1/4] (short) (narrow) %v354_v15, 8 }
 0x141   : > { %362 = vxpose.xlu0.b32.cont [2/4] (short) (narrow) %v355_v16, 8 }
 0x145   : > { %363 = vxpose.xlu0.b32.cont [3/4] (short) (narrow) %v356_v17, 8 }
 0x149   : > { %364 = vxpose.xlu0.b32.end [4/4] (short) (narrow) %v357_v18, 8 }
 0x179   : > { %v439_v19 = vpop.permute.xlu0 %438  ;;  %v443_v37 = vpop.permute.xlu1 %442 }
 0x17d   : > { %v450_v20 = vpop.permute.xlu0 %449 }
 0x181   : > { %v454_v21 = vpop.permute.xlu0 %453 }
 0x185   : > { %v461_v22 = vpop.permute.xlu0 %460 }
 0x189   : > { %v465_v23 = vpop.permute.xlu0 %464 }
 0x18d   : > { %v472_v26 = vpop.permute.xlu0 %471 }
 0x191   : > { %v476_v28 = vpop.permute.xlu0 %475 }
 0x1bd   : > { %v377_v30 = vpop.trf.xlu0 }
 0x1be   : > { %v484_v31 = vrot.slane %v377_v30, %v483_v29 }
 0x1c0   : > { %v485_v32 = vcombine.high %v484_v31, %v484_v31  ;;  %v492_v33 = vrot.slane %v484_v31, %v483_v29 }
 0x1c2   : > { %v499_v34 = vrot.slane %v485_v32, %v483_v29  ;;  %v505_v35 = vrot.slane %v492_v33, %v1472_v6  ;;  %v500_v62 = vcombine.high %v492_v33, %v492_v33 }
 0x1c4   : > { %v501_v38 = vcombine.high %v499_v34, %v499_v34  ;;  %v509_v39 = vrot.slane %v499_v34, %v1472_v6  ;;  %v522_v40 = vadd.f32 %v505_v35, %v439_v19  ;;  %v523_v41 = vadd.f32 %v505_v35, %v443_v37 }
 0x1c5   : > { %v513_v63 = vrot.slane %v500_v62, %v1472_v6 }
 0x1c6   : > { %v530_v43 = vmul.f32 0.2, %v522_v40  ;;  %v524_v44 = vadd.f32 %v509_v39, %v450_v20  ;;  %v531_v45 = vmul.f32 0.2, %v523_v41  ;;  %v517_v46 = vrot.slane %v501_v38, %v1472_v6 }
 0x1c7   : > { %v525_v0 = vadd.f32 %v509_v39, %v454_v21  ;;  %v526_v2 = vadd.f32 %v513_v63, %v461_v22  ;;  %v527_v5 = vadd.f32 %v513_v63, %v465_v23  ;;  %v1528_v22 = vld [vmem:[%s1644_s1 + $0x8] sm:$0xff]  }
 0x1c8   : > { %v538_v48 = vmax.f32 %v522_v40, %v530_v43  ;;  %v532_v49 = vmul.f32 0.2, %v524_v44  ;;  %v539_v50 = vmax.f32 %v523_v41, %v531_v45  ;;  %v528_v51 = vadd.f32 %v517_v46, %v472_v26  ;;  %1261 = vmatpush3.bf16.msra.mxu0 %v1528_v22 }
 0x1c9   : > { %v529_v52 = vadd.f32 %v517_v46, %v476_v28  ;;  %v533_v1 = vmul.f32 0.2, %v525_v0  ;;  %v534_v4 = vmul.f32 0.2, %v526_v2  ;;  %v535_v9 = vmul.f32 0.2, %v527_v5  ;;  %1274 = vmatprep.subr.bf16.mxu0 %v1404_v61 }
 0x1ca   : > { %v546_v53 = vadd.f32 %v1495_v42, %v538_v48  ;;  %v540_v54 = vmax.f32 %v524_v44, %v532_v49  ;;  %v547_v57 = vadd.f32 %v1498_v47, %v539_v50  ;;  %v536_v13 = vmul.f32 0.2, %v528_v51 }
 0x1cb   : > { %v541_v3 = vmax.f32 %v525_v0, %v533_v1  ;;  %v542_v8 = vmax.f32 %v526_v2, %v534_v4  ;;  %v543_v12 = vmax.f32 %v527_v5, %v535_v9  ;;  %v537_v16 = vmul.f32 0.2, %v529_v52 }
 0x1cc   : > { %v555_v55 = vsel %vm554_vm0, %v546_v53, -inf  ;;  %v548_v56 = vadd.f32 %v1495_v42, %v540_v54  ;;  %v558_v59 = vsel %vm554_vm0, %v547_v57, -inf  ;;  %v544_v15 = vmax.f32 %v528_v51, %v536_v13 }
 0x1cd   : > { %556 = vmax.xlane.f32.xlu1 %v555_v55  ;;  %v549_v7 = vadd.f32 %v1498_v47, %v541_v3  ;;  %v550_v11 = vadd.f32 %v1495_v42, %v542_v8  ;;  %v551_v6 = vadd.f32 %v1498_v47, %v543_v12  ;;  %v545_v19 = vmax.f32 %v529_v52, %v537_v16 }
 0x1ce   : > { %v561_v58 = vsel %vm554_vm0, %v548_v56, -inf  ;;  %v552_v18 = vadd.f32 %v1495_v42, %v544_v15 }
 0x1cf   : > { %562 = vmax.xlane.f32.xlu0 %v561_v58  ;;  %v564_v10 = vsel %vm554_vm0, %v549_v7, -inf  ;;  %v567_v14 = vsel %vm554_vm0, %v550_v11, -inf  ;;  %v570_v17 = vsel %vm554_vm0, %v551_v6, -inf  ;;  %v1523_v21 = vadd.f32 %v1498_v47, %v545_v19 }
 0x1d0   : > { %v573_v20 = vsel %vm554_vm0, %v552_v18, -inf }
 0x1d1   : > { %559 = vmax.xlane.f32.xlu1 %v558_v59  ;;  %v576_v23 = vsel %vm554_vm0, %v1523_v21, -inf }
 0x1e2   : > { %703 = vrot.lane.b32.xlu1 %v1355_v60, %s1403_s28 }
 0x1e5   : > { %705 = vrot.lane.b32.xlu0 %v1528_v22, %s1403_s28  ;;  %s337_s28 = scalar_lea.vmem %s1650_s7, %s1198_s21 }
 0x206   : > { %565 = vmax.xlane.f32.xlu1 %v564_v10 }
 0x20a   : > { %568 = vmax.xlane.f32.xlu1 %v567_v14 }
 0x20e   : > { %571 = vmax.xlane.f32.xlu1 %v570_v17 }
 0x212   : > { %574 = vmax.xlane.f32.xlu1 %v573_v20 }
 0x216   : > { %577 = vmax.xlane.f32.xlu1 %v576_v23 }
 0x227   : > { %753 = vrot.lane.b32.xlu1 %v1355_v60, %s1405_s11 }
 0x22b   : > { %803 = vrot.lane.b32.xlu1 %v1355_v60, %s1406_s12 }
 0x25a   : > { %v557_v24 = vpop.xlane.xlu1 %556 }
 0x25b   : > { %v579_v25 = vsub.f32 %v546_v53, %v557_v24 }
 0x25c   : > { %v563_v26 = vpop.xlane.xlu0 %562 }
 0x25d   : > { %v587_v27 = vmul.f32 1.442695, %v579_v25  ;;  %v581_v28 = vsub.f32 %v548_v56, %v563_v26 }
 0x25e   : > { %v560_v29 = vpop.xlane.xlu1 %559 }
 0x25f   : > { %1361 = vpow2.f32 %v587_v27  ;;  %v580_v30 = vsub.f32 %v547_v57, %v560_v29  ;;  %v591_v31 = vmul.f32 1.442695, %v581_v28 }
 0x260   : > { %v706_v40 = vpop.permute.xlu0 %705 }
 0x261   : > { %v589_v32 = vmul.f32 1.442695, %v580_v30 }
 0x262   : > { %v704_v33 = vpop.permute.xlu1 %703 }
 0x263   : > { %1363 = vpow2.f32 %v589_v32  ;;  %1267 = vmatpush3.bf16.msra.mxu1 %v704_v33 }
 0x264   : > { %1268 = vmatprep.subr.bf16.mxu1 %v1404_v61  ;;  %1365 = vpow2.f32 %v591_v31 }
 0x267   : > { %1269 = vmatpush3.bf16.msra.mxu1 %v706_v40 }
 0x268   : > { %1282 = vmatprep.subr.bf16.mxu1 %v1404_v61 }
 0x269   : > { %v1362_v34 = vpop.eup %1361 }
 0x26a   : > { %v603_v35 = vsel %vm554_vm0, %v1362_v34, 0.0 }
 0x26b   : > { %604 = vadd.xlane.f32.xlu1 %v603_v35 }
 0x26d   : > { %v1364_v36 = vpop.eup %1363 }
 0x26e   : > { %v606_v37 = vsel %vm554_vm0, %v1364_v36, 0.0  ;;  %v1541_v38 = vpop.eup %1365 }
 0x26f   : > { %607 = vadd.xlane.f32.xlu1 %v606_v37  ;;  %v609_v39 = vsel %vm554_vm0, %v1541_v38, 0.0  ;;  %v885_v37 = vsel %vm554_vm0, %v1495_v42, -inf }
 0x273   : > { %610 = vadd.xlane.f32.xlu1 %v609_v39 }
 0x293   : > { %v566_v41 = vpop.xlane.xlu1 %565 }
 0x294   : > { %v582_v43 = vsub.f32 %v549_v7, %v566_v41 }
 0x296   : > { %v593_v44 = vmul.f32 1.442695, %v582_v43 }
 0x297   : > { %v569_v45 = vpop.xlane.xlu1 %568 }
 0x298   : > { %1367 = vpow2.f32 %v593_v44  ;;  %v583_v46 = vsub.f32 %v550_v11, %v569_v45  ;;  %v1357_v44 = vld [vmem:[%s1648_s5] sm:$0xff]  }
 0x29a   : > { %v595_v48 = vmul.f32 1.442695, %v583_v46 }
 0x29b   : > { %v572_v49 = vpop.xlane.xlu1 %571 }
 0x29c   : > { %1369 = vpow2.f32 %v595_v48  ;;  %v584_v50 = vsub.f32 %v551_v6, %v572_v49  ;;  %v1358_v48 = vld [vmem:[%s1648_s5 + $0x8] sm:$0xff]   ;;  %v1359_v49 = vld [vmem:[%s1648_s5 + $0x10] sm:$0xff]  }
 0x29e   : > { %v597_v51 = vmul.f32 1.442695, %v584_v50 }
 0x29f   : > { %v575_v52 = vpop.xlane.xlu1 %574 }
 0x2a0   : > { %1371 = vpow2.f32 %v597_v51  ;;  %v585_v53 = vsub.f32 %v552_v18, %v575_v52 }
 0x2a2   : > { %v1368_v54 = vpop.eup %1367  ;;  %v599_v55 = vmul.f32 1.442695, %v585_v53 }
 0x2a3   : > { %v578_v56 = vpop.xlane.xlu1 %577  ;;  %v612_v57 = vsel %vm554_vm0, %v1368_v54, 0.0 }
 0x2a4   : > { %1373 = vpow2.f32 %v599_v55  ;;  %v586_v58 = vsub.f32 %v1523_v21, %v578_v56  ;;  %613 = vadd.xlane.f32.xlu1 %v612_v57  ;;  %v987_v55 = vld [vmem:[%s1649_s6] sm:$0xff]  ;;  %v988_v56 = vld [vmem:[%s1649_s6 + $0x8] sm:$0xff]  ;;  %v989_v57 = vld [vmem:[%s1649_s6 + $0x10] sm:$0xff] }
 0x2a6   : > { %v1370_v59 = vpop.eup %1369  ;;  %v601_v60 = vmul.f32 1.442695, %v586_v58 }
 0x2a7   : > { %v615_v62 = vsel %vm554_vm0, %v1370_v59, 0.0  ;;  %v754_v5 = vpop.permute.xlu1 %753 }
 0x2a8   : > { %1375 = vpow2.f32 %v601_v60  ;;  %616 = vadd.xlane.f32.xlu1 %v615_v62  ;;  %v990_v60 = vld [vmem:[%s1649_s6 + $0x18] sm:$0xff] }
 0x2aa   : > { %v1372_v63 = vpop.eup %1371 }
 0x2ab   : > { %v618_v0 = vsel %vm554_vm0, %v1372_v63, 0.0  ;;  %v804_v7 = vpop.permute.xlu1 %803 }
 0x2ac   : > { %619 = vadd.xlane.f32.xlu1 %v618_v0  ;;  %v991_v0 = vld [vmem:[%s1649_s6 + $0x20] sm:$0xff] }
 0x2ae   : > { %v1374_v1 = vpop.eup %1373 }
 0x2af   : > { %v621_v2 = vsel %vm554_vm0, %v1374_v1, 0.0 }
 0x2b0   : > { %622 = vadd.xlane.f32.xlu1 %v621_v2 }
 0x2b2   : > { %v1376_v3 = vpop.eup %1375 }
 0x2b3   : > { %v624_v4 = vsel %vm554_vm0, %v1376_v3, 0.0 }
 0x2b4   : > { %625 = vadd.xlane.f32.xlu0 %v624_v4 }
 0x2c1   : > { %805 = vrot.lane.b32.xlu1 %v1528_v22, %s1406_s12 }
 0x2ca   : > { %755 = vrot.lane.b32.xlu0 %v1528_v22, %s1405_s11  ;;  %s343_s11 = scalar_lea.vmem %s1651_s8, %s1200_s30 }
 0x2e9   : > { %886 = vmax.xlane.f32.xlu0 %v885_v37 }
 0x2f8   : > { %v605_v8 = vpop.xlane.xlu1 %604 }
 0x2f9   : > { %1377 = vrcp.f32 %v605_v8 }
 0x2fc   : > { %v608_v9 = vpop.xlane.xlu1 %607 }
 0x2fd   : > { %1379 = vrcp.f32 %v608_v9 }
 0x300   : > { %v611_v6 = vpop.xlane.xlu1 %610 }
 0x301   : > { %1381 = vrcp.f32 %v611_v6 }
 0x303   : > { %v1378_v10 = vpop.eup %1377 }
 0x304   : > { %v635_v12 = vmul.f32 %v1378_v10, %v1362_v34 }
 0x307   : > { %v1380_v11 = vpop.eup %1379 }
 0x308   : > { %v636_v13 = vmul.f32 %v1380_v11, %v1364_v36 }
 0x30a   : > { %v643_v14 = vpack.c.bf16 %v636_v13, %v635_v12 }
 0x30b   : > { %v1382_v18 = vpop.eup %1381 }
 0x30c   : > { %1263 = vmatmul.mubr.msk.bf16.vlgmr.msra.gmra.mrb[0].mxu0 %vm554_vm0, %v643_v14  ;;  %v637_v21 = vmul.f32 %v1382_v18, %v1541_v38  ;;  %v888_v38 = vsel %vm554_vm0, %v1498_v47, -inf }
 0x30d   : > { %1275 = vmatpush3.bf16.msra.mxu0 %v754_v5  ;;  %1278 = vmatprep.mubr.msk.bf16.mxu0 %vm1407_vm1, %v1404_v61  ;;  %v993_v5 = vld [vmem:[%s1649_s6 + $0x30] sm:$0xff] }
 0x30e   : > { %1276 = vmatprep.subr.bf16.mxu0 %v1404_v61  ;;  %889 = vmax.xlane.f32.xlu1 %v888_v38 }
 0x331   : > { %v614_v15 = vpop.xlane.xlu1 %613 }
 0x332   : > { %1383 = vrcp.f32 %v614_v15 }
 0x335   : > { %v617_v16 = vpop.xlane.xlu1 %616 }
 0x336   : > { %1385 = vrcp.f32 %v617_v16 }
 0x339   : > { %v620_v17 = vpop.xlane.xlu1 %619 }
 0x33a   : > { %1387 = vrcp.f32 %v620_v17 }
 0x33c   : > { %v1384_v19 = vpop.eup %1383 }
 0x33d   : > { %v623_v20 = vpop.xlane.xlu1 %622  ;;  %v638_v22 = vmul.f32 %v1384_v19, %v1368_v54  ;;  %v1360_v54 = vld [vmem:[%s1648_s5 + $0x18] sm:$0xff]   ;;  %v1213_v19 = vld [vmem:[%s1647_s4] ss:$0 sm:$0xff] }
 0x33e   : > { %1389 = vrcp.f32 %v623_v20 }
 0x33f   : > { %v644_v23 = vpack.c.bf16 %v638_v22, %v637_v21 }
 0x340   : > { %v1386_v25 = vpop.eup %1385 }
 0x341   : > { %v626_v24 = vpop.xlane.xlu0 %625  ;;  %1271 = vmatmul.mubr.msk.bf16.vlgmr.msra.gmra.mrb[0].mxu1 %vm554_vm0, %v644_v23  ;;  %v806_v26 = vpop.permute.xlu1 %805  ;;  %v639_v28 = vmul.f32 %v1386_v25, %v1370_v59  ;;  %v1321_v59 = vpack.c.bf16 %v988_v56, %v987_v55 }
 0x342   : > { %1391 = vrcp.f32 %v626_v24  ;;  %1283 = vmatpush3.bf16.msra.mxu1 %v804_v7  ;;  %1286 = vmatprep.mubr.msk.bf16.mxu1 %vm1407_vm1, %v1404_v61  ;;  %v994_v7 = vld [vmem:[%s1649_s6 + $0x38] sm:$0xff] }
 0x343   : > { %1284 = vmatprep.subr.bf16.mxu1 %v1404_v61  ;;  %v1333_v8 = vpack.c.bf16 %v994_v7, %v993_v5 }
 0x344   : > { %v1388_v27 = vpop.eup %1387 }
 0x345   : > { %v640_v29 = vmul.f32 %v1388_v27, %v1372_v63  ;;  %v756_v30 = vpop.permute.xlu0 %755  ;;  %v1325_v63 = vpack.c.bf16 %v990_v60, %v989_v57 }
 0x346   : > { %1277 = vmatpush3.bf16.msra.mxu0 %v756_v30  ;;  %1285 = vmatpush3.bf16.msra.mxu1 %v806_v26 }
 0x347   : > { %v645_v31 = vpack.c.bf16 %v640_v29, %v639_v28  ;;  %1290 = vmatprep.subr.bf16.mxu0 %v1404_v61  ;;  %1322 = vmatprep.subr.bf16.mxu1 %v1321_v59 }
 0x348   : > { %v1390_v32 = vpop.eup %1389 }
 0x349   : > { %1279 = vmatmul.mubr.msk.bf16.vlgmr.msra.gmra.mrb[4].mxu0 %vm554_vm0, %v645_v31  ;;  %v641_v34 = vmul.f32 %v1390_v32, %v1374_v1  ;;  %v992_v1 = vld [vmem:[%s1649_s6 + $0x28] sm:$0xff] }
 0x34a   : > { %1298 = vmatprep.mubr.msk.bf16.mxu0 %vm1407_vm1, %v1404_v61  ;;  %1291 = vmatpush3.bf16.msra.mxu0 %v1357_v44  ;;  %v1329_v4 = vpack.c.bf16 %v992_v1, %v991_v0 }
 0x34b   : > { %1292 = vmatprep.subr.bf16.mxu0 %v1404_v61 }
 0x34c   : > { %v1392_v33 = vpop.eup %1391 }
 0x34d   : > { %v642_v35 = vmul.f32 %v1392_v33, %v1376_v3 }
 0x34e   : > { %1293 = vmatpush3.bf16.msra.mxu0 %v1358_v48 }
 0x34f   : > { %v646_v36 = vpack.c.bf16 %v642_v35, %v641_v34  ;;  %1294 = vmatprep.subr.bf16.mxu0 %v1404_v61 }
 0x351   : > { %1287 = vmatmul.mubr.msk.bf16.vlgmr.msra.gmra.mrb[4].mxu1 %vm554_vm0, %v646_v36 }
 0x352   : > { %1295 = vmatpush3.bf16.msra.mxu0 %v1359_v49  ;;  %1324 = vmatpush3.bf16.msra.mxu1 %v1321_v59 }
 0x353   : > { %1296 = vmatprep.subr.bf16.mxu0 %v1404_v61  ;;  %1326 = vmatprep.subr.bf16.mxu1 %v1325_v63 }
 0x356   : > { %1297 = vmatpush3.bf16.msra.mxu0 %v1360_v54  ;;  %1328 = vmatpush3.bf16.msra.mxu1 %v1325_v63 }
 0x357   : > { %1330 = vmatprep.subr.bf16.mxu1 %v1329_v4 }
 0x35a   : > { %1332 = vmatpush3.bf16.msra.mxu1 %v1329_v4 }
 0x35b   : > { %1334 = vmatprep.subr.bf16.mxu1 %v1333_v8 }
 0x35e   : > { %1336 = vmatpush3.bf16.msra.mxu1 %v1333_v8 }
 0x376   : > { %v887_v9 = vpop.xlane.xlu0 %886 }
 0x377   : > { %vm891_vm3 = vcmp.gt.f32.partialorder %v887_v9, -1.0 }
 0x378   : > { %v1211_v17 = vsel %vm891_vm3, 1.0, %v1404_v61 }
 0x39b   : > { %v890_v10 = vpop.xlane.xlu1 %889 }
 0x39c   : > { %vm892_vm5 = vcmp.gt.f32.partialorder %v890_v10, -1.0 }
 0x39d   : > { %v1212_v24 = vsel %vm892_vm5, 1.0, %v1404_v61 }
 0x3df   : > { %v1578_v39 = vpop.f32.mrb[0].mxu0 }
 0x3e0   : > { %v1264_v40 = vpop.f32.mrb[1].mxu0 }
 0x3e1   : > { %v1580_v41 = vpop.f32.mrb[2].mxu0 }
 0x3e2   : > { %v1265_v43 = vpop.f32.mrb[3].mxu0 }
 0x414   : > { %v746_v45 = vpop.f32.mrb[0].mxu1 }
 0x415   : > { %855 = vrot.lane.b32.xlu0 %v746_v45, %s1408_s15  ;;  %v1272_v42 = vpop.f32.mrb[1].mxu1 }
 0x416   : > { %v749_v47 = vpop.f32.mrb[2].mxu1 }
 0x417   : > { %857 = vrot.lane.b32.xlu1 %v749_v47, %s1408_s15  ;;  %v1273_v46 = vpop.f32.mrb[3].mxu1 }
 0x41c   : > { %v796_v50 = vpop.f32.mrb[4].mxu0 }
 0x41d   : > { %863 = vrot.lane.b32.xlu0 %v796_v50, %s1409_s20  ;;  %v1280_v51 = vpop.f32.mrb[5].mxu0 }
 0x41e   : > { %v799_v52 = vpop.f32.mrb[6].mxu0 }
 0x41f   : > { %865 = vrot.lane.b32.xlu1 %v799_v52, %s1409_s20  ;;  %v1281_v53 = vpop.f32.mrb[7].mxu0 }
 0x424   : > { %v846_v58 = vpop.f32.mrb[4].mxu1 }
 0x425   : > { %871 = vrot.lane.b32.xlu0 %v846_v58, %s1410_s13  ;;  %v1288_v62 = vpop.f32.mrb[5].mxu1 }
 0x426   : > { %v849_v2 = vpop.f32.mrb[6].mxu1 }
 0x427   : > { %873 = vrot.lane.b32.xlu1 %v849_v2, %s1410_s13  ;;  %v1289_v3 = vpop.f32.mrb[7].mxu1 }
 0x487   : > { %v856_v11 = vpop.permute.xlu0 %855 }
 0x488   : > { %v878_v6 = vsel %vm877_vm2, %v1578_v39, %v856_v11 }
 0x489   : > { %v858_v12 = vpop.permute.xlu1 %857 }
 0x48a   : > { %v879_v18 = vsel %vm877_vm2, %v1580_v41, %v858_v12 }
 0x48f   : > { %v864_v13 = vpop.permute.xlu0 %863 }
 0x490   : > { %v880_v15 = vsel %vm554_vm0, %v878_v6, %v864_v13 }
 0x491   : > { %v866_v14 = vpop.permute.xlu1 %865 }
 0x492   : > { %v881_v21 = vsel %vm554_vm0, %v879_v18, %v866_v14 }
 0x497   : > { %v872_v16 = vpop.permute.xlu0 %871 }
 0x498   : > { %v883_v20 = vsel %vm882_vm4, %v880_v15, %v872_v16 }
 0x499   : > { %v897_v22 = vmul.f32 %v1211_v17, %v883_v20  ;;  %v874_v23 = vpop.permute.xlu1 %873 }
 0x49a   : > { %v884_v25 = vsel %vm882_vm4, %v881_v21, %v874_v23 }
 0x49b   : > { %v905_v26 = vadd.f32 %v1213_v19, %v897_v22  ;;  %v898_v27 = vmul.f32 %v1212_v24, %v884_v25 }
 0x49d   : > { %v906_v28 = vadd.f32 %v1213_v19, %v898_v27  ;;  %v907_v29 = vmax.f32 %v905_v26, 0.0 }
 0x49f   : > { %v908_v30 = vmax.f32 %v906_v28, 0.0 }
 0x4a1   : > { %v909_v31 = vpack.c.bf16 %v908_v30, %v907_v29 }
 0x4a3   : > { %1299 = vmatmul.mubr.msk.bf16.vlgmr.msra.gmra.mrb[8].mxu0 %vm942_vm6, %v909_v31 }
 0x576   : > { %v980_v32 = vpop.f32.mrb[8].mxu0 }
 0x577   : > { %v1225_v33 = vpack.c.bf16 %v980_v32, %v980_v32  ;;  %v1300_v34 = vpop.f32.mrb[9].mxu0  ;;  %1318 = vmatprep.mubr.msk.f32.mxu1 %vm942_vm6, %v980_v32 }
 0x578   : > { %v983_v61 = vpop.f32.mrb[10].mxu0 }
 0x579   : > { %1088 = vst.msk [vmem:[%s337_s28] sm:$0xf] %vm1087_vm7, %v1225_v33  ;;  %v1226_v35 = vpack.c.bf16 %v983_v61, %v983_v61  ;;  %v1301_v36 = vpop.f32.mrb[11].mxu0  ;;  %1319 = vmatmul.mubr.msk.f32.vlgmr.msra.gmra.mrb[8].mxu1 %vm942_vm6, %v983_v61 }
 0x57b   : > { %1089 = vst.msk [vmem:[%s337_s28 + $0x4] sm:$0xf] %vm1087_vm7, %v1226_v35 }
 0x64c   : > { %v1320_v37 = vpop.f32.mrb[8].mxu1 }
 0x64d   : > { %v1067_v38 = vpop.f32.mrb[9].mxu1  ;;  %1078 = vst.msk [vmem:[%s343_s11 + $0x8] sm:$0xff] %vm1076_vm8, %v1320_v37 }
 0x64e   : > { %1077 = vst.msk [vmem:[%s343_s11] sm:$0xff] %vm1076_vm8, %v1067_v38 }
 0x64f PF: > { %s19_s27 = sadd.s32 1, %s1399_s27  }
 0x650   : > { %p16_p4 = scmp.ge.s32.totalorder %s19_s27, 4  }
 0x652   :  { %18 = sbr.rel (!%p16_p4) target bundleno = 1 (0x1), region = 93 }

// kernel: gat_graph_classifier.5
= control target key start
LH: loop header
LB: loop body
LE: loop exit
PB: predicated region body
PF: predicated region fallthrough
CT: control target
= control target key end

     0   :  { %13 = vsyncpa [#allocation4], 0  ;;  %s1433_s27 = smov 0   ;;  %s1624_s0 = inlined_call_operand.vmem [shape: bf16[32,32], index: 0, kind: input, shape index: {}]   ;;  %s1625_s1 = inlined_call_operand.vmem [shape: bf16[32,64], index: 1, kind: input, shape index: {}]   ;;  %s1626_s2 = inlined_call_operand.vmem [shape: f32[32,8], index: 2, kind: input, shape index: {}, may-alias: {2,3}]   ;;  %s1627_s3 = inlined_call_operand.vmem [shape: f32[32,8], index: 3, kind: input, shape index: {}, may-alias: {2,3}]   ;;  %s1628_s4 = inlined_call_operand.vmem [shape: f32[1,64], index: 4, kind: input, shape index: {}]   ;;  %s1629_s5 = inlined_call_operand.vmem [shape: bf16[32,4], index: 5, kind: input, shape index: {}]   ;;  %s1630_s6 = inlined_call_operand.vmem [shape: f32[64,128], index: 6, kind: input, shape index: {}]   ;;  %s1631_s7 = inlined_call_operand.vmem [shape: f32[1,128], index: 7, kind: input, shape index: {}]   ;;  %s1632_s8 = inlined_call_operand.hbm [shape: f32[4,128], index: 8, kind: output, shape index: {}]  }
   0x1 LB: > { %s1439_s28 = sadd.s32 4294967295, %s1371_s27   ;;  %p1148_p0 = scmp.ge.s32.totalorder %s1371_s27, 1  ;;  %s1371_s27 = sphi %s1433_s27, %s19_s27  }
   0x2   : > { %p281_p1 = scmp.lt.s32.totalorder %s1371_s27, 3 }
   0x4   : > { %p282_p2 = pnand %p1148_p0, %p281_p1 }
   0x5   : > { %s1149_s29 = sshll.u32 (!%p282_p2), %s1439_s28, 1  ;;  %p1155_p4 = scmp.ne.s32.totalorder (!%p282_p2), %s1439_s28, 0 }
   0x6   : > { %285 = sbr.rel (%p282_p2) target bundleno = 1660 (0x67c), region = 52  ;;  %p321_p3 = scmp.lt.s32.totalorder (!%p282_p2), %s1149_s29, 3 }
   0xd   : > { %s1634_s29 = smov (!%p321_p3, %s1149_s29), 3  ;;  %342 = sbr.rel (%p1155_p4) target bundleno = 20 (0x14), region = 56 }
   0xe   : > { %s1150_s30 = sshll.u32 %s1634_s29, 2  ;;  %s1152_s9 = sshll.u32 %s1634_s29, 3  ;;  %vm343_vm0 = vcmask (!%p1155_p4), 519168   ;;  %v1373_v0 = vmov (!%p1155_p4), 0.0  }
   0xf   : > { %s1447_s12 = scalar_lea.vmem %s1624_s0, %s1150_s30  ;;  %s330_s15 = scalar_lea.vmem %s1627_s3, %s1152_s9  ;;  %344 = vst.msk [vmem:[#allocation2] sm:$0xf] (!%p1155_p4), %vm343_vm0, %v1373_v0 }
  0x10   : > { %s1455_s18 = scalar_lea.vmem %s1629_s5, %s1150_s30 }
  0x14 PF: > { %v357_v1 = vld [vmem:[%s330_s15] sm:$0xff]  ;;  %s1374_s19 = smov 124   ;;  %v358_v2 = vld [vmem:[%s330_s15 + $0x8] sm:$0xff]  ;;  %v432_v5 = vlaneseq  ;;  %v355_v18 = vld [vmem:[%s1626_s2 + $0x10] sm:$0xff]  ;;  %v1375_v25 = vmov 1966171168  }
  0x15   : > { %394 = vrot.lane.b32.xlu0 %v357_v1, %s1374_s19  ;;  %v353_v16 = vld [vmem:[%s1626_s2] sm:$0xff]  ;;  %v354_v17 = vld [vmem:[%s1626_s2 + $0x8] sm:$0xff]  ;;  %v356_v19 = vld [vmem:[%s1626_s2 + $0x18] sm:$0xff]  ;;  %v478_v26 = vunpack.c.l.s4 %v1375_v25  ;;  %vm553_vm1 = vcmask 261120   ;;  %s1376_s10 = smov 112   ;;  %v1377_v62 = vmov 0.0  }
  0x16   : > { %v433_v6 = vshrl.u32 %v432_v5, 7  ;;  %v1175_v37 = vld [vmem:[%s1447_s12] sm:$0xff]   ;;  %1209 = vmatprep.subr.bf16.mxu1 %v1377_v62  ;;  %1201 = vmatprep.subr.bf16.mxu0 %v1377_v62  ;;  %s1378_s13 = smov 96   ;;  %s1379_s14 = smov 80   ;;  %vm1380_vm2 = vmmov 0   ;;  %vm876_vm3 = vcmask 130048  }
  0x17   : > { %v479_v28 = vunpack.c.0.s8 %v478_v26  ;;  %v1476_v43 = vunpack.c.l.bf16 %v1175_v37  ;;  %v1479_v50 = vunpack.c.h.bf16 %v1175_v37  ;;  %v1300_v61 = vld [vmem:[%s1625_s1] sm:$0xff]   ;;  %1205 = vmatprep.mubr.msk.bf16.mxu0 %vm1380_vm2, %v1377_v62  ;;  %1213 = vmatprep.mubr.msk.bf16.mxu1 %vm1380_vm2, %v1377_v62  ;;  %s1381_s15 = smov 16   ;;  %s1382_s16 = smov 32   ;;  %vm881_vm5 = vcmask 392192  }
  0x18   : > { %v1458_v7 = vsub.s32 0, %v433_v6  ;;  %v445_v10 = vsub.s32 1, %v433_v6  ;;  %v456_v12 = vsub.s32 2, %v433_v6  ;;  %v467_v14 = vsub.s32 3, %v433_v6  ;;  %1202 = vmatpush3.bf16.msra.mxu0 %v1300_v61  ;;  %s1383_s17 = smov 48   ;;  %p1167_p5 = scmp.ne.s32.totalorder %s1439_s28, 1 }
  0x19   : > { %396 = vrot.lane.b32.xlu0 %v358_v2, %s1374_s19  ;;  %v482_v30 = vsub.s32 %v479_v28, %v433_v6  ;;  %1203 = vmatprep.subr.bf16.mxu0 %v1377_v62  ;;  %vm978_vm7 = vcmask 519168   ;;  %vm1385_vm8 = vmmov (!%p1167_p5), 0   ;;  %vm1000_vm9 = vcmask (!%p1167_p5), 523264  }
  0x87   : > { %v395_v3 = vpop.permute.xlu0 %394 }
  0x88   : > { %400 = vxpose.xlu1.b32.start [1/2] (short) (narrow) %v395_v3, 8 }
  0x8b   : > { %v397_v4 = vpop.permute.xlu0 %396 }
  0x8c   : > { %401 = vxpose.xlu1.b32.end [2/2] (short) (narrow) %v397_v4, 8 }
 0x108   : > { %v416_v8 = vpop.trf.xlu1 }
 0x109   : > { %v435_v9 = vrot.slane %v416_v8, %v1458_v7  ;;  %v446_v11 = vrot.slane %v416_v8, %v445_v10  ;;  %v457_v13 = vrot.slane %v416_v8, %v456_v12  ;;  %v468_v15 = vrot.slane %v416_v8, %v467_v14 }
 0x10b   : > { %441 = vbcast.lane.b32.xlu1 %v435_v9, 264  ;;  %437 = vbcast.lane.b32.xlu0 %v435_v9, 256 }
 0x10f   : > { %448 = vbcast.lane.b32.xlu0 %v446_v11, 256 }
 0x113   : > { %452 = vbcast.lane.b32.xlu0 %v446_v11, 264 }
 0x117   : > { %459 = vbcast.lane.b32.xlu0 %v457_v13, 256 }
 0x11b   : > { %463 = vbcast.lane.b32.xlu0 %v457_v13, 264 }
 0x11f   : > { %470 = vbcast.lane.b32.xlu0 %v468_v15, 256 }
 0x123   : > { %474 = vbcast.lane.b32.xlu0 %v468_v15, 264 }
 0x141   : > { %360 = vxpose.xlu0.b32.start [1/4] (short) (narrow) %v353_v16, 8 }
 0x145   : > { %361 = vxpose.xlu0.b32.cont [2/4] (short) (narrow) %v354_v17, 8 }
 0x149   : > { %362 = vxpose.xlu0.b32.cont [3/4] (short) (narrow) %v355_v18, 8 }
 0x14d   : > { %363 = vxpose.xlu0.b32.end [4/4] (short) (narrow) %v356_v19, 8 }
 0x17d   : > { %v438_v20 = vpop.permute.xlu0 %437  ;;  %v442_v38 = vpop.permute.xlu1 %441 }
 0x181   : > { %v449_v21 = vpop.permute.xlu0 %448 }
 0x185   : > { %v453_v22 = vpop.permute.xlu0 %452 }
 0x189   : > { %v460_v23 = vpop.permute.xlu0 %459 }
 0x18d   : > { %v464_v24 = vpop.permute.xlu0 %463 }
 0x191   : > { %v471_v27 = vpop.permute.xlu0 %470 }
 0x195   : > { %v475_v29 = vpop.permute.xlu0 %474 }
 0x1c1   : > { %v376_v31 = vpop.trf.xlu0 }
 0x1c2   : > { %v483_v32 = vrot.slane %v376_v31, %v482_v30 }
 0x1c4   : > { %v484_v33 = vcombine.high %v483_v32, %v483_v32  ;;  %v491_v34 = vrot.slane %v483_v32, %v482_v30 }
 0x1c6   : > { %v498_v35 = vrot.slane %v484_v33, %v482_v30  ;;  %v504_v36 = vrot.slane %v491_v34, %v1458_v7  ;;  %v499_v63 = vcombine.high %v491_v34, %v491_v34 }
 0x1c8   : > { %v500_v39 = vcombine.high %v498_v35, %v498_v35  ;;  %v508_v40 = vrot.slane %v498_v35, %v1458_v7  ;;  %v521_v41 = vadd.f32 %v504_v36, %v438_v20  ;;  %v522_v42 = vadd.f32 %v504_v36, %v442_v38 }
 0x1c9   : > { %v512_v0 = vrot.slane %v499_v63, %v1458_v7 }
 0x1ca   : > { %v529_v44 = vmul.f32 0.2, %v521_v41  ;;  %v523_v45 = vadd.f32 %v508_v40, %v449_v21  ;;  %v530_v46 = vmul.f32 0.2, %v522_v42  ;;  %v516_v47 = vrot.slane %v500_v39, %v1458_v7 }
 0x1cb   : > { %v524_v1 = vadd.f32 %v508_v40, %v453_v22  ;;  %v525_v3 = vadd.f32 %v512_v0, %v460_v23  ;;  %v526_v6 = vadd.f32 %v512_v0, %v464_v24  ;;  %v1509_v23 = vld [vmem:[%s1625_s1 + $0x8] sm:$0xff]  }
 0x1cc   : > { %v537_v48 = vmax.f32 %v521_v41, %v529_v44  ;;  %v531_v49 = vmul.f32 0.2, %v523_v45  ;;  %v538_v51 = vmax.f32 %v522_v42, %v530_v46  ;;  %v527_v52 = vadd.f32 %v516_v47, %v471_v27  ;;  %1204 = vmatpush3.bf16.msra.mxu0 %v1509_v23 }
 0x1cd   : > { %v528_v53 = vadd.f32 %v516_v47, %v475_v29  ;;  %v532_v2 = vmul.f32 0.2, %v524_v1  ;;  %v533_v5 = vmul.f32 0.2, %v525_v3  ;;  %v534_v10 = vmul.f32 0.2, %v526_v6  ;;  %1217 = vmatprep.subr.bf16.mxu0 %v1377_v62 }
 0x1ce   : > { %v545_v54 = vadd.f32 %v1476_v43, %v537_v48  ;;  %v539_v55 = vmax.f32 %v523_v45, %v531_v49  ;;  %v546_v58 = vadd.f32 %v1479_v50, %v538_v51  ;;  %v535_v14 = vmul.f32 0.2, %v527_v52 }
 0x1cf   : > { %v540_v4 = vmax.f32 %v524_v1, %v532_v2  ;;  %v541_v9 = vmax.f32 %v525_v3, %v533_v5  ;;  %v542_v13 = vmax.f32 %v526_v6, %v534_v10  ;;  %v536_v17 = vmul.f32 0.2, %v528_v53 }
 0x1d0   : > { %v554_v56 = vsel %vm553_vm1, %v545_v54, -inf  ;;  %v547_v57 = vadd.f32 %v1476_v43, %v539_v55  ;;  %v557_v60 = vsel %vm553_vm1, %v546_v58, -inf  ;;  %v543_v16 = vmax.f32 %v527_v52, %v535_v14 }
 0x1d1   : > { %555 = vmax.xlane.f32.xlu1 %v554_v56  ;;  %v548_v8 = vadd.f32 %v1479_v50, %v540_v4  ;;  %v549_v12 = vadd.f32 %v1476_v43, %v541_v9  ;;  %v550_v7 = vadd.f32 %v1479_v50, %v542_v13  ;;  %v544_v20 = vmax.f32 %v528_v53, %v536_v17 }
 0x1d2   : > { %v560_v59 = vsel %vm553_vm1, %v547_v57, -inf  ;;  %v551_v19 = vadd.f32 %v1476_v43, %v543_v16 }
 0x1d3   : > { %561 = vmax.xlane.f32.xlu0 %v560_v59  ;;  %v563_v11 = vsel %vm553_vm1, %v548_v8, -inf  ;;  %v566_v15 = vsel %vm553_vm1, %v549_v12, -inf  ;;  %v569_v18 = vsel %vm553_vm1, %v550_v7, -inf  ;;  %v1504_v22 = vadd.f32 %v1479_v50, %v544_v20 }
 0x1d4   : > { %v572_v21 = vsel %vm553_vm1, %v551_v19, -inf }
 0x1d5   : > { %558 = vmax.xlane.f32.xlu1 %v557_v60  ;;  %v575_v24 = vsel %vm553_vm1, %v1504_v22, -inf }
 0x1e6   : > { %702 = vrot.lane.b32.xlu1 %v1300_v61, %s1376_s10 }
 0x1e9   : > { %704 = vrot.lane.b32.xlu0 %v1509_v23, %s1376_s10 }
 0x20a   : > { %564 = vmax.xlane.f32.xlu1 %v563_v11 }
 0x20e   : > { %567 = vmax.xlane.f32.xlu1 %v566_v15 }
 0x212   : > { %570 = vmax.xlane.f32.xlu1 %v569_v18 }
 0x216   : > { %573 = vmax.xlane.f32.xlu1 %v572_v21 }
 0x21a   : > { %576 = vmax.xlane.f32.xlu1 %v575_v24 }
 0x22b   : > { %752 = vrot.lane.b32.xlu1 %v1300_v61, %s1378_s13 }
 0x22f   : > { %802 = vrot.lane.b32.xlu1 %v1300_v61, %s1379_s14 }
 0x25e   : > { %v556_v25 = vpop.xlane.xlu1 %555 }
 0x25f   : > { %v578_v26 = vsub.f32 %v545_v54, %v556_v25 }
 0x260   : > { %v562_v27 = vpop.xlane.xlu0 %561 }
 0x261   : > { %v586_v28 = vmul.f32 1.442695, %v578_v26  ;;  %v580_v29 = vsub.f32 %v547_v57, %v562_v27 }
 0x262   : > { %v559_v30 = vpop.xlane.xlu1 %558 }
 0x263   : > { %1303 = vpow2.f32 %v586_v28  ;;  %v579_v31 = vsub.f32 %v546_v58, %v559_v30  ;;  %v590_v32 = vmul.f32 1.442695, %v580_v29 }
 0x264   : > { %v705_v41 = vpop.permute.xlu0 %704 }
 0x265   : > { %v588_v33 = vmul.f32 1.442695, %v579_v31 }
 0x266   : > { %v703_v34 = vpop.permute.xlu1 %702 }
 0x267   : > { %1305 = vpow2.f32 %v588_v33  ;;  %1210 = vmatpush3.bf16.msra.mxu1 %v703_v34 }
 0x268   : > { %1211 = vmatprep.subr.bf16.mxu1 %v1377_v62  ;;  %1307 = vpow2.f32 %v590_v32 }
 0x26b   : > { %1212 = vmatpush3.bf16.msra.mxu1 %v705_v41 }
 0x26c   : > { %1225 = vmatprep.subr.bf16.mxu1 %v1377_v62 }
 0x26d   : > { %v1304_v35 = vpop.eup %1303 }
 0x26e   : > { %v602_v36 = vsel %vm553_vm1, %v1304_v35, 0.0 }
 0x26f   : > { %603 = vadd.xlane.f32.xlu1 %v602_v36 }
 0x271   : > { %v1306_v37 = vpop.eup %1305 }
 0x272   : > { %v605_v38 = vsel %vm553_vm1, %v1306_v37, 0.0  ;;  %v1522_v39 = vpop.eup %1307 }
 0x273   : > { %606 = vadd.xlane.f32.xlu1 %v605_v38  ;;  %v608_v40 = vsel %vm553_vm1, %v1522_v39, 0.0  ;;  %v884_v38 = vsel %vm553_vm1, %v1476_v43, -inf }
 0x277   : > { %609 = vadd.xlane.f32.xlu1 %v608_v40 }
 0x297   : > { %v565_v42 = vpop.xlane.xlu1 %564 }
 0x298   : > { %v581_v44 = vsub.f32 %v548_v8, %v565_v42 }
 0x29a   : > { %v592_v45 = vmul.f32 1.442695, %v581_v44 }
 0x29b   : > { %v568_v46 = vpop.xlane.xlu1 %567 }
 0x29c   : > { %1309 = vpow2.f32 %v592_v45  ;;  %v582_v47 = vsub.f32 %v549_v12, %v568_v46 }
 0x29e   : > { %v594_v48 = vmul.f32 1.442695, %v582_v47 }
 0x29f   : > { %v571_v49 = vpop.xlane.xlu1 %570 }
 0x2a0   : > { %1311 = vpow2.f32 %v594_v48  ;;  %v583_v51 = vsub.f32 %v550_v7, %v571_v49 }
 0x2a2   : > { %v596_v52 = vmul.f32 1.442695, %v583_v51 }
 0x2a3   : > { %v574_v53 = vpop.xlane.xlu1 %573 }
 0x2a4   : > { %1313 = vpow2.f32 %v596_v52  ;;  %v584_v54 = vsub.f32 %v551_v19, %v574_v53 }
 0x2a6   : > { %v1310_v55 = vpop.eup %1309  ;;  %v598_v56 = vmul.f32 1.442695, %v584_v54 }
 0x2a7   : > { %v577_v57 = vpop.xlane.xlu1 %576  ;;  %v611_v58 = vsel %vm553_vm1, %v1310_v55, 0.0 }
 0x2a8   : > { %1315 = vpow2.f32 %v598_v56  ;;  %v585_v59 = vsub.f32 %v1504_v22, %v577_v57  ;;  %612 = vadd.xlane.f32.xlu1 %v611_v58  ;;  %v1302_v56 = vld [vmem:[%s1455_s18] sm:$0xff]  }
 0x2aa   : > { %v1312_v60 = vpop.eup %1311  ;;  %v600_v61 = vmul.f32 1.442695, %v585_v59 }
 0x2ab   : > { %v614_v63 = vsel %vm553_vm1, %v1312_v60, 0.0  ;;  %v753_v6 = vpop.permute.xlu1 %752 }
 0x2ac   : > { %1317 = vpow2.f32 %v600_v61  ;;  %615 = vadd.xlane.f32.xlu1 %v614_v63 }
 0x2ae   : > { %v1314_v0 = vpop.eup %1313 }
 0x2af   : > { %v617_v1 = vsel %vm553_vm1, %v1314_v0, 0.0  ;;  %v803_v8 = vpop.permute.xlu1 %802 }
 0x2b0   : > { %618 = vadd.xlane.f32.xlu1 %v617_v1 }
 0x2b2   : > { %v1316_v2 = vpop.eup %1315 }
 0x2b3   : > { %v620_v3 = vsel %vm553_vm1, %v1316_v2, 0.0 }
 0x2b4   : > { %621 = vadd.xlane.f32.xlu1 %v620_v3 }
 0x2b6   : > { %v1318_v4 = vpop.eup %1317 }
 0x2b7   : > { %v623_v5 = vsel %vm553_vm1, %v1318_v4, 0.0 }
 0x2b8   : > { %624 = vadd.xlane.f32.xlu0 %v623_v5  ;;  %v1164_v5 = vld [vmem:[%s1628_s4] ss:$0 sm:$0xff] }
 0x2c5   : > { %804 = vrot.lane.b32.xlu1 %v1509_v23, %s1379_s14 }
 0x2ce   : > { %754 = vrot.lane.b32.xlu0 %v1509_v23, %s1378_s13 }
 0x2ed   : > { %885 = vmax.xlane.f32.xlu0 %v884_v38 }
 0x2fc   : > { %v604_v9 = vpop.xlane.xlu1 %603 }
 0x2fd   : > { %1319 = vrcp.f32 %v604_v9 }
 0x300   : > { %v607_v10 = vpop.xlane.xlu1 %606 }
 0x301   : > { %1321 = vrcp.f32 %v607_v10 }
 0x304   : > { %v610_v7 = vpop.xlane.xlu1 %609 }
 0x305   : > { %1323 = vrcp.f32 %v610_v7 }
 0x307   : > { %v1320_v11 = vpop.eup %1319 }
 0x308   : > { %v634_v13 = vmul.f32 %v1320_v11, %v1304_v35 }
 0x30b   : > { %v1322_v12 = vpop.eup %1321 }
 0x30c   : > { %v635_v14 = vmul.f32 %v1322_v12, %v1306_v37 }
 0x30e   : > { %v642_v15 = vpack.c.bf16 %v635_v14, %v634_v13 }
 0x30f   : > { %v1324_v19 = vpop.eup %1323 }
 0x310   : > { %1206 = vmatmul.mubr.msk.bf16.vlgmr.msra.gmra.mrb[0].mxu0 %vm553_vm1, %v642_v15  ;;  %v636_v22 = vmul.f32 %v1324_v19, %v1522_v39  ;;  %v887_v39 = vsel %vm553_vm1, %v1479_v50, -inf  ;;  %v908_v19 = vld [vmem:[#allocation2] sm:$0xf] }
 0x311   : > { %1218 = vmatpush3.bf16.msra.mxu0 %v753_v6  ;;  %1221 = vmatprep.mubr.msk.bf16.mxu0 %vm1380_vm2, %v1377_v62 }
 0x312   : > { %1219 = vmatprep.subr.bf16.mxu0 %v1377_v62  ;;  %888 = vmax.xlane.f32.xlu1 %v887_v39  ;;  %v1168_v39 = vld [vmem:[%s1631_s7] ss:$0 sm:$0xff] (!%p1167_p5) }
 0x335   : > { %v613_v16 = vpop.xlane.xlu1 %612 }
 0x336   : > { %1325 = vrcp.f32 %v613_v16 }
 0x339   : > { %v616_v17 = vpop.xlane.xlu1 %615 }
 0x33a   : > { %1327 = vrcp.f32 %v616_v17 }
 0x33d   : > { %v619_v18 = vpop.xlane.xlu1 %618 }
 0x33e   : > { %1329 = vrcp.f32 %v619_v18 }
 0x340   : > { %v1326_v20 = vpop.eup %1325 }
 0x341   : > { %v622_v21 = vpop.xlane.xlu1 %621  ;;  %v637_v23 = vmul.f32 %v1326_v20, %v1310_v55 }
 0x342   : > { %1331 = vrcp.f32 %v622_v21 }
 0x343   : > { %v643_v24 = vpack.c.bf16 %v637_v23, %v636_v22 }
 0x344   : > { %v1328_v26 = vpop.eup %1327 }
 0x345   : > { %v625_v25 = vpop.xlane.xlu0 %624  ;;  %1214 = vmatmul.mubr.msk.bf16.vlgmr.msra.gmra.mrb[0].mxu1 %vm553_vm1, %v643_v24  ;;  %v805_v27 = vpop.permute.xlu1 %804  ;;  %v638_v29 = vmul.f32 %v1328_v26, %v1312_v60  ;;  %v987_v26 = vld [vmem:[%s1630_s6 + $0x10] sm:$0xff] (!%p1167_p5) }
 0x346   : > { %1333 = vrcp.f32 %v625_v25  ;;  %1226 = vmatpush3.bf16.msra.mxu1 %v803_v8  ;;  %1229 = vmatprep.mubr.msk.bf16.mxu1 %vm1380_vm2, %v1377_v62  ;;  %v986_v25 = vld [vmem:[%s1630_s6 + $0x8] sm:$0xff] (!%p1167_p5) }
 0x347   : > { %1227 = vmatprep.subr.bf16.mxu1 %v1377_v62 }
 0x348   : > { %v1330_v28 = vpop.eup %1329 }
 0x349   : > { %v639_v30 = vmul.f32 %v1330_v28, %v1314_v0  ;;  %v755_v31 = vpop.permute.xlu0 %754 }
 0x34a   : > { %1220 = vmatpush3.bf16.msra.mxu0 %v755_v31  ;;  %1228 = vmatpush3.bf16.msra.mxu1 %v805_v27  ;;  %v1384_v27 = vmov (!%p1167_p5), 0.0|0.0  }
 0x34b   : > { %v644_v32 = vpack.c.bf16 %v639_v30, %v638_v29  ;;  %1233 = vmatprep.subr.bf16.mxu0 %v1377_v62  ;;  %v988_v29 = vld [vmem:[%s1630_s6 + $0x18] sm:$0xff] (!%p1167_p5)  ;;  %v1386_v30 = vmov (!%p1167_p5), 0.0  }
 0x34c   : > { %v1332_v33 = vpop.eup %1331  ;;  %v1262_v31 = vpack.c.bf16 (!%p1167_p5), %v988_v29, %v987_v26 }
 0x34d   : > { %1222 = vmatmul.mubr.msk.bf16.vlgmr.msra.gmra.mrb[4].mxu0 %vm553_vm1, %v644_v32  ;;  %v640_v35 = vmul.f32 %v1332_v33, %v1316_v2  ;;  %v989_v32 = vld [vmem:[%s1630_s6 + $0x20] sm:$0xff] (!%p1167_p5)  ;;  %v990_v33 = vld [vmem:[%s1630_s6 + $0x28] sm:$0xff] (!%p1167_p5) }
 0x34e   : > { %1235 = vmatprep.mubr.msk.bf16.mxu0 %vm1380_vm2, %v1377_v62 }
 0x350   : > { %v1334_v34 = vpop.eup %1333 }
 0x351   : > { %v641_v36 = vmul.f32 %v1334_v34, %v1318_v4  ;;  %v1265_v34 = vpack.c.bf16 (!%p1167_p5), %v990_v33, %v989_v32 }
 0x353   : > { %v645_v37 = vpack.c.bf16 %v641_v36, %v640_v35  ;;  %v991_v35 = vld [vmem:[%s1630_s6 + $0x30] sm:$0xff] (!%p1167_p5)  ;;  %v992_v36 = vld [vmem:[%s1630_s6 + $0x38] sm:$0xff] (!%p1167_p5) }
 0x355   : > { %1230 = vmatmul.mubr.msk.bf16.vlgmr.msra.gmra.mrb[4].mxu1 %vm553_vm1, %v645_v37  ;;  %v1268_v37 = vpack.c.bf16 (!%p1167_p5), %v992_v36, %v991_v35 }
 0x37a   : > { %v886_v57 = vpop.xlane.xlu0 %885 }
 0x37b   : > { %vm890_vm4 = vcmp.gt.f32.partialorder %v886_v57, -1.0 }
 0x37c   : > { %v1162_v3 = vsel %vm890_vm4, 1.0, %v1377_v62 }
 0x39f   : > { %v889_v58 = vpop.xlane.xlu1 %888 }
 0x3a0   : > { %vm891_vm6 = vcmp.gt.f32.partialorder %v889_v58, -1.0 }
 0x3a1   : > { %v1163_v11 = vsel %vm891_vm6, 1.0, %v1377_v62  ;;  %v985_v62 = vld [vmem:[%s1630_s6] sm:$0xff] (!%p1167_p5) }
 0x3a2   : > { %v1259_v28 = vpack.c.bf16 (!%p1167_p5), %v986_v25, %v985_v62 }
 0x3e3   : > { %v695_v40 = vpop.f32.mrb[0].mxu0 }
 0x3e4   : > { %v1207_v41 = vpop.f32.mrb[1].mxu0 }
 0x3e5   : > { %v698_v42 = vpop.f32.mrb[2].mxu0 }
 0x3e6   : > { %v1208_v44 = vpop.f32.mrb[3].mxu0 }
 0x418   : > { %v745_v45 = vpop.f32.mrb[0].mxu1 }
 0x419   : > { %854 = vrot.lane.b32.xlu0 %v745_v45, %s1381_s15  ;;  %v1215_v46 = vpop.f32.mrb[1].mxu1 }
 0x41a   : > { %v748_v47 = vpop.f32.mrb[2].mxu1 }
 0x41b   : > { %856 = vrot.lane.b32.xlu1 %v748_v47, %s1381_s15  ;;  %v1216_v48 = vpop.f32.mrb[3].mxu1 }
 0x420   : > { %v795_v49 = vpop.f32.mrb[4].mxu0 }
 0x421   : > { %862 = vrot.lane.b32.xlu0 %v795_v49, %s1382_s16  ;;  %v1223_v43 = vpop.f32.mrb[5].mxu0 }
 0x422   : > { %v798_v51 = vpop.f32.mrb[6].mxu0 }
 0x423   : > { %864 = vrot.lane.b32.xlu1 %v798_v51, %s1382_s16  ;;  %v1224_v50 = vpop.f32.mrb[7].mxu0 }
 0x428   : > { %v845_v52 = vpop.f32.mrb[4].mxu1 }
 0x429   : > { %870 = vrot.lane.b32.xlu0 %v845_v52, %s1383_s17  ;;  %v1231_v53 = vpop.f32.mrb[5].mxu1 }
 0x42a   : > { %v848_v54 = vpop.f32.mrb[6].mxu1 }
 0x42b   : > { %872 = vrot.lane.b32.xlu1 %v848_v54, %s1383_s17  ;;  %v1232_v55 = vpop.f32.mrb[7].mxu1 }
 0x447   : > { %918 = vxpose.xlu0.c.b16.start.end [1/1] (short) (narrow) %v1302_v56, 16 }
 0x48b   : > { %v855_v59 = vpop.permute.xlu0 %854 }
 0x48c   : > { %v877_v0 = vsel %vm876_vm3, %v695_v40, %v855_v59 }
 0x48d   : > { %v857_v60 = vpop.permute.xlu1 %856 }
 0x48e   : > { %v878_v4 = vsel %vm876_vm3, %v698_v42, %v857_v60 }
 0x493   : > { %v863_v61 = vpop.permute.xlu0 %862 }
 0x494   : > { %v879_v1 = vsel %vm553_vm1, %v877_v0, %v863_v61 }
 0x495   : > { %v865_v63 = vpop.permute.xlu1 %864 }
 0x496   : > { %v880_v8 = vsel %vm553_vm1, %v878_v4, %v865_v63 }
 0x49b   : > { %v871_v2 = vpop.permute.xlu0 %870 }
 0x49c   : > { %v882_v6 = vsel %vm881_vm5, %v879_v1, %v871_v2 }
 0x49d   : > { %v896_v9 = vmul.f32 %v1162_v3, %v882_v6  ;;  %v873_v10 = vpop.permute.xlu1 %872 }
 0x49e   : > { %v883_v12 = vsel %vm881_vm5, %v880_v8, %v873_v10 }
 0x49f   : > { %v904_v13 = vadd.f32 %v1164_v5, %v896_v9  ;;  %v897_v14 = vmul.f32 %v1163_v11, %v883_v12 }
 0x4a1   : > { %v905_v15 = vadd.f32 %v1164_v5, %v897_v14  ;;  %v906_v7 = vmax.f32 %v904_v13, 0.0 }
 0x4a3   : > { %v907_v16 = vmax.f32 %v905_v15, 0.0 }
 0x4a5   : > { %v911_v17 = vpack.c.bf16 %v907_v16, %v906_v7 }
 0x4a7   : > { %1234 = vmatpush3.bf16.msra.mxu0 %v911_v17 }
 0x4a8   : > { %1258 = vmatprep.subr.bf16.mxu0 (!%p1167_p5), %v1384_v27 }
 0x4ad   : > { %v926_v18 = vpop.trf.xlu0 }
 0x4ae   : > { %1236 = vmatmul.mubr.msk.bf16.vlgmr.msra.gmra.mrb[8].mxu0 %vm876_vm3, %v926_v18 }
 0x4af   : > { %1255 = vmatprep.mubr.msk.f32.mxu0 (!%p1167_p5), %vm1385_vm8, %v1386_v30  ;;  %1260 = vmatpush3.bf16.msra.mxu0 (!%p1167_p5), %v1259_v28 }
 0x4b0   : > { %1261 = vmatprep.subr.bf16.mxu0 (!%p1167_p5), %v1384_v27 }
 0x4b3   : > { %1263 = vmatpush3.bf16.msra.mxu0 (!%p1167_p5), %v1262_v31 }
 0x4b4   : > { %1264 = vmatprep.subr.bf16.mxu0 (!%p1167_p5), %v1384_v27 }
 0x4b7   : > { %1266 = vmatpush3.bf16.msra.mxu0 (!%p1167_p5), %v1265_v34 }
 0x4b8   : > { %1267 = vmatprep.subr.bf16.mxu0 (!%p1167_p5), %v1384_v27 }
 0x4bb   : > { %1269 = vmatpush3.bf16.msra.mxu0 (!%p1167_p5), %v1268_v37 }
 0x57e   : > { %983 = sbr.rel (%p1167_p5) target bundleno = 1635 (0x663), region = 60 }
 0x581   : > { %v971_v20 = vpop.f32.mrb[8].mxu0 }
 0x582   : > { %v977_v21 = vadd.f32 %v971_v20, %v908_v19  ;;  %v1237_v22 = vpop.f32.mrb[9].mxu0 }
 0x583   : > { %v974_v23 = vpop.f32.mrb[10].mxu0 }
 0x584   : > { %979 = vst.msk [vmem:[#allocation2] sm:$0xf] %vm978_vm7, %v977_v21  ;;  %v1238_v24 = vpop.f32.mrb[11].mxu0 }
 0x58b   : > { %v984_v38 = vld [vmem:[#allocation2] sm:$0xf] }
 0x58c   : > { %1256 = vmatmul.mubr.msk.f32.vlgmr.msra.gmra.mrb[0].mxu0 %vm1000_vm9, %v984_v38 }
 0x65f   : > { %v1070_v40 = vpop.f32.mrb[0].mxu0 }
 0x660   : > { %v1071_v41 = vadd.f32 %v1168_v39, %v1070_v40  ;;  %v1257_v42 = vpop.f32.mrb[1].mxu0 }
 0x662   : > { %1074 = vst [vmem:[#allocation3] sm:$0xf] %v1071_v41 }
 0x663 PF: > { %p1274_p6 = scmp.eq.s32.totalorder %s1439_s28, 1  ;;  %s1387_s18 = smov [#allocation3]  }
 0x664   : > { %s1082_s19 = sshll.u32 %s1387_s18, 4  ;;  %s1083_s19 = int_to_ptr.vmem [resolvable:$true] %s1082_s19 }
 0x665   : > { %s1335_s20 = scalar_lea.vmem %s1083_s19, 64  ;;  %p1342_p10 = scmp.lt.s32.totalorder %s1083_s19, %s1083_s19 }
 0x666   : > { %p1336_p7 = scmp.ne.s32.totalorder %s1083_s19, %s1335_s20  ;;  %p1343_p11 = scmp.lt.s32.totalorder %s1335_s20, %s1335_s20 }
 0x668   : > { %p1337_p8 = pnand %p1336_p7, %p1274_p6  ;;  %p1344_p12 = por %p1343_p11, %p1342_p10 }
 0x66a   : > { %p1338_p9 = pneg %p1337_p8 }
 0x66c   : > { %p1345_p13 = pnand %p1344_p12, %p1338_p9 }
 0x66e   : > { %1348 = shalt.err (!%p1345_p13)
}
 0x66f   : > { %s1349_s23 = scalar_lea.hbm %s1632_s8, 64 }
 0x670   : > { %p1350_p0 = scmp.ne.s32.totalorder %s1632_s8, %s1349_s23  ;;  %p1355_p3 = scmp.lt.u32.totalorder %s1349_s23, %s1632_s8 }
 0x672   : > { %p1351_p1 = pnand %p1350_p0, %p1274_p6 }
 0x674   : > { %p1352_p2 = pneg %p1351_p1 }
 0x676   : > { %p1357_p4 = pnand %p1355_p3, %p1352_p2 }
 0x678   : > { %1360 = shalt.err (!%p1357_p4)
}
 0x679   : > { %1271 = dma.vmem_to_hbm [thread:$0]  (%p1274_p6), %s1083_s19, 64, %s1632_s8, [#allocation4]  }
 0x67a   : > { %1366 = dma.done.wait (%p1274_p6), [#allocation4], 64  }
 0x67b   : > { %1368 = vsyncadd (%p1274_p6), [#allocation4], 4294967232 }
 0x67c PF: > { %s19_s27 = sadd.s32 1, %s1371_s27  }
 0x67d   : > { %p16_p5 = scmp.ge.s32.totalorder %s19_s27, 4  }
 0x67f   :  { %18 = sbr.rel (!%p16_p5) target bundleno = 1 (0x1), region = 93 }
 0x686   :  { %1095 = vsyncpa [#allocation4], 1 }
 0x687   :  { %1097 = vsyncpa [#allocation4 + $0x1], 1 }

</bundles_post_ra>
